<compile_context>
chip_gen: v7x
topology: tpu7x:2x2x1
jax: 0.10.0
libtpu: 0.0.40
codegen_flags: <defaults>
</compile_context>

<pallas_src>
import numpy as np
import jax
import jax.numpy as jnp
from jax.experimental import pallas as pl
from jax.experimental.pallas import tpu as pltpu

EPS = 1e-5

# order of the six BaseConv2d_factor modules stacked into one parameter set
_FACTOR_MODS = ('a2', 'a3', 'b2', 'd2', 'd3', 'd4')
# argument order of the packed parameters fed to the kernel
_PACK_ORDER = ('pad', 'wstemT', 'bstem', 'sstem', 'tstem',
               'w1T', 'b1', 'w2T', 'b2', 'sc', 'sh', 'fscale', 'fshift')


def _full_spec(shape):
    """Whole-array block (params stay resident across the grid)."""
    rank = len(shape)
    return pl.BlockSpec(shape, lambda n: (0,) * rank)


# ------------------------------- fused kernel --------------------------------

def _make_incept_kernel(H, W):
    HW = H * W

    def kernel(x_ref, pad_ref, wst_ref, bst_ref, sst_ref, tst_ref,
               w1_ref, b1_ref, w2_ref, b2_ref, sc_ref, sh_ref,
               fs_ref, ft_ref, o_ref):
        C4 = wst_ref.shape[0]
        C = C4 // 4

        x = x_ref[0]                                            # (Cin, HW)

        # ---- fused 1x1 stems (a1,b1,c1,d1): one matmul + ReLU + folded BN ----
        y = jnp.dot(wst_ref[...], x, preferred_element_type=jnp.float32)
        y = jnp.maximum(y + bst_ref[...], 0.0) * sst_ref[...] + tst_ref[...]

        # precomputed 0/1 edge masks (neighbor-exists) for zero padding
        m_up, m_dn = pad_ref[0], pad_ref[1]     # row h-1 / h+1 exists  (1, HW)
        m_lt, m_rt = pad_ref[2], pad_ref[3]     # col w-1 / w+1 exists  (1, HW)

        def conv3(h, w_t, m_lo, m_hi, s):
            # 3-tap conv along one spatial direction (padding=1): taps built
            # with XLU rolls + multiplicative edge masks, then a single
            # im2col matmul (Cout, 3*Cin) @ (3*Cin, HW).
            t_lo = pltpu.roll(h, s, axis=1) * m_lo        # value at p - s
            t_hi = pltpu.roll(h, HW - s, axis=1) * m_hi   # value at p + s
            taps = jnp.concatenate([t_lo, h, t_hi], axis=0)
            return jnp.dot(w_t, taps, preferred_element_type=jnp.float32)

        def factor(h, m):
            # BaseConv2d_factor: conv(3,1)->ReLU->conv(1,3)->ReLU->folded BN,
            # all kept in registers (no VMEM scratch, no HBM round trip).
            h = jnp.maximum(conv3(h, w1_ref[m], m_up, m_dn, W) + b1_ref[m], 0.0)
            h = jnp.maximum(conv3(h, w2_ref[m], m_lt, m_rt, 1) + b2_ref[m], 0.0)
            return h * sc_ref[m] + sh_ref[m]

        xa = factor(factor(y[0 * C:1 * C], 0), 1)       # branch a: a2, a3
        xb = factor(y[1 * C:2 * C], 2)                  # branch b: b2
        xc = y[2 * C:3 * C]                             # branch c: stem only
        xd = factor(factor(factor(y[3 * C:4 * C], 3), 4), 5)  # d2, d3, d4

        # concat (channel-major) + final ReLU + final BN, lane-dense store
        cat = jnp.concatenate([xa, xb, xc, xd], axis=0)        # (4C, HW)
        o_ref[0] = jnp.maximum(cat, 0.0) * fs_ref[...] + ft_ref[...]

    return kernel


# ------------------------------ module forward -------------------------------

def incept_module_b_factor(x_nchw, pk):
    """Whole Inception-B block in a single pallas_call."""
    N, Cin, H, W = x_nchw.shape
    HW = H * W
    C4 = pk['wstemT'].shape[0]
    x = x_nchw.reshape(N, Cin, HW)          # NCHW is already channel-major

    out = pl.pallas_call(
        _make_incept_kernel(H, W),
        out_shape=jax.ShapeDtypeStruct((N, C4, HW), jnp.float32),
        grid=(N,),
        in_specs=[pl.BlockSpec((1, Cin, HW), lambda n: (n, 0, 0))]
                + [_full_spec(pk[k].shape) for k in _PACK_ORDER],
        out_specs=pl.BlockSpec((1, C4, HW), lambda n: (n, 0, 0)),
        compiler_params=pltpu.CompilerParams(
            dimension_semantics=("parallel",)),
    )(x, *(pk[k] for k in _PACK_ORDER))

    return out.reshape(N, C4, H, W)         # metadata-only reshape to NCHW


# --------------------------- parameter initialization ------------------------

def _bn_affine(key, c):
    k1, k2, k3, k4 = jax.random.split(key, 4)
    gamma = 1.0 + 0.1 * jax.random.normal(k1, (c,), jnp.float32)
    beta = 0.1 * jax.random.normal(k2, (c,), jnp.float32)
    mean = 0.05 * jax.random.normal(k3, (c,), jnp.float32)
    var = 0.5 + jax.random.uniform(k4, (c,), jnp.float32)
    scale = gamma / jnp.sqrt(var + EPS)
    shift = beta - mean * scale
    return scale, shift


def init_base_conv(key, cin, cout):
    k1, k2, k3 = jax.random.split(key, 3)
    w = 0.1 * jax.random.normal(k1, (cin, cout), jnp.float32)   # 1x1 conv
    b = 0.05 * jax.random.normal(k2, (cout,), jnp.float32)
    scale, shift = _bn_affine(k3, cout)
    return dict(w=w, b=b, scale=scale, shift=shift)


def init_factor(key, cin, cout):
    k1, k2, k3, k4, k5 = jax.random.split(key, 5)
    w1 = 0.1 * jax.random.normal(k1, (3, cin, cout), jnp.float32)   # (3,1) conv
    b1 = 0.05 * jax.random.normal(k2, (cout,), jnp.float32)
    w2 = 0.1 * jax.random.normal(k3, (3, cout, cout), jnp.float32)  # (1,3) conv
    b2 = 0.05 * jax.random.normal(k4, (cout,), jnp.float32)
    scale, shift = _bn_affine(k5, cout)
    return dict(w1=w1, b1=b1, w2=w2, b2=b2, scale=scale, shift=shift)


def init_incept_b(key, cin, cout):
    ks = jax.random.split(key, 11)
    p = {
        'a1': init_base_conv(ks[0], cin, cout),
        'a2': init_factor(ks[1], cout, cout),
        'a3': init_factor(ks[2], cout, cout),
        'b1': init_base_conv(ks[3], cin, cout),
        'b2': init_factor(ks[4], cout, cout),
        'c1': init_base_conv(ks[5], cin, cout),
        'd1': init_base_conv(ks[6], cin, cout),
        'd2': init_factor(ks[7], cout, cout),
        'd3': init_factor(ks[8], cout, cout),
        'd4': init_factor(ks[9], cout, cout),
    }
    scale, shift = _bn_affine(ks[10], 4 * cout)
    p['final_scale'] = scale
    p['final_shift'] = shift
    return p


def pack_params(p, H, W):
    """One-time packing/transposition of parameters into kernel-ready form."""
    C = p['a1']['w'].shape[1]
    stems = ('a1', 'b1', 'c1', 'd1')
    wstemT = jnp.concatenate([p[k]['w'] for k in stems], axis=1).T      # (4C,Cin)
    bstem = jnp.concatenate([p[k]['b'] for k in stems])[:, None]        # (4C,1)
    sstem = jnp.concatenate([p[k]['scale'] for k in stems])[:, None]
    tstem = jnp.concatenate([p[k]['shift'] for k in stems])[:, None]

    # im2col weights: W_T[co, k*Cin + ci] = w[k, ci, co]
    w1T = jnp.stack([p[m]['w1'].reshape(3 * C, C).T for m in _FACTOR_MODS])
    w2T = jnp.stack([p[m]['w2'].reshape(3 * C, C).T for m in _FACTOR_MODS])
    b1 = jnp.stack([p[m]['b1'][:, None] for m in _FACTOR_MODS])         # (6,C,1)
    b2 = jnp.stack([p[m]['b2'][:, None] for m in _FACTOR_MODS])
    sc = jnp.stack([p[m]['scale'][:, None] for m in _FACTOR_MODS])
    sh = jnp.stack([p[m]['shift'][:, None] for m in _FACTOR_MODS])

    # 0/1 "neighbor exists" masks over the flattened spatial axis (p = h*W+w)
    HW = H * W
    pos = np.arange(HW)
    pad = np.stack([pos >= W,                 # row h-1 exists
                    pos < HW - W,             # row h+1 exists
                    (pos % W) != 0,           # col w-1 exists
                    (pos % W) != W - 1])      # col w+1 exists
    pad = jnp.asarray(pad.astype(np.float32))[:, None, :]               # (4,1,HW)

    return dict(pad=pad, wstemT=wstemT, bstem=bstem, sstem=sstem, tstem=tstem,
                w1T=w1T, b1=b1, w2T=w2T, b2=b2, sc=sc, sh=sh,
                fscale=p['final_scale'][:, None],
                fshift=p['final_shift'][:, None])


# ------------------------------ pure-JAX reference ----------------------------

_HI = jax.lax.Precision.HIGHEST


def _ref_mm(x, w):
    return jnp.einsum('nhwc,cd->nhwd', x, w, precision=_HI)


def _ref_conv3(x, w, b, axis):
    pad = [(0, 0)] * 4
    pad[axis] = (1, 1)
    xp = jnp.pad(x, pad)
    L = x.shape[axis]
    acc = 0.0
    for k in range(3):
        sl = [slice(None)] * 4
        sl[axis] = slice(k, k + L)
        acc = acc + _ref_mm(xp[tuple(sl)], w[k])
    return acc + b


def _ref_base_conv(x, p):
    y = jnp.maximum(_ref_mm(x, p['w']) + p['b'], 0.0)
    return y * p['scale'] + p['shift']


def _ref_base_factor(x, p):
    y = jnp.maximum(_ref_conv3(x, p['w1'], p['b1'], axis=1), 0.0)
    y = jnp.maximum(_ref_conv3(y, p['w2'], p['b2'], axis=2), 0.0)
    return y * p['scale'] + p['shift']


def ref_incept(x_nchw, p):
    x = jnp.transpose(x_nchw, (0, 2, 3, 1))
    xa = _ref_base_conv(x, p['a1'])
    xa = _ref_base_factor(xa, p['a2'])
    xa = _ref_base_factor(xa, p['a3'])
    xb = _ref_base_conv(x, p['b1'])
    xb = _ref_base_factor(xb, p['b2'])
    xc = _ref_base_conv(x, p['c1'])
    xd = _ref_base_conv(x, p['d1'])
    xd = _ref_base_factor(xd, p['d2'])
    xd = _ref_base_factor(xd, p['d3'])
    xd = _ref_base_factor(xd, p['d4'])
    cat = jnp.concatenate([xa, xb, xc, xd], axis=-1)
    out = jnp.maximum(cat, 0.0) * p['final_scale'] + p['final_shift']
    return jnp.transpose(out, (0, 3, 1, 2))


# ----------------------------------- main -------------------------------------

if __name__ == "__main__":
    key = jax.random.PRNGKey(0)
    kx, kp = jax.random.split(key)

    N, Cin, H, W = 2, 4, 16, 16
    Cout = 8

    x = jax.random.normal(kx, (N, Cin, H, W), jnp.float32)   # NCHW, like PyTorch
    params = init_incept_b(kp, Cin, Cout)
    packed = pack_params(params, H, W)       # one-time packing (not per forward)

    fwd = jax.jit(incept_module_b_factor)
    out = jax.block_until_ready(fwd(x, packed))
    assert out.shape == (N, 4 * Cout, H, W), out.shape

    ref = ref_incept(x, params)
    np.testing.assert_allclose(np.asarray(out), np.asarray(ref),
                               rtol=1e-3, atol=1e-3)

    print("KERNEL_OK")
</pallas_src>

<mosaic_0001>
module attributes {stable_mosaic.version = 11 : i64} {
  func.func @kernel(%arg0: i32, %arg1: memref<1x4x256xf32, #tpu.memory_space<vmem>>, %arg2: memref<4x1x256xf32, #tpu.memory_space<vmem>>, %arg3: memref<32x4xf32, #tpu.memory_space<vmem>>, %arg4: memref<32x1xf32, #tpu.memory_space<vmem>>, %arg5: memref<32x1xf32, #tpu.memory_space<vmem>>, %arg6: memref<32x1xf32, #tpu.memory_space<vmem>>, %arg7: memref<6x8x24xf32, #tpu.memory_space<vmem>>, %arg8: memref<6x8x1xf32, #tpu.memory_space<vmem>>, %arg9: memref<6x8x24xf32, #tpu.memory_space<vmem>>, %arg10: memref<6x8x1xf32, #tpu.memory_space<vmem>>, %arg11: memref<6x8x1xf32, #tpu.memory_space<vmem>>, %arg12: memref<6x8x1xf32, #tpu.memory_space<vmem>>, %arg13: memref<32x1xf32, #tpu.memory_space<vmem>>, %arg14: memref<32x1xf32, #tpu.memory_space<vmem>>, %arg15: memref<1x32x256xf32, #tpu.memory_space<vmem>>) attributes {dimension_semantics = [#tpu.dimension_semantics<parallel>], iteration_bounds = array<i64: 2>, scalar_prefetch = 0 : i64, scratch_operands = 0 : i64, tpu.core_type = #tpu.core_type<tc>, window_params = [{transform_indices = @transform_0, window_bounds = array<i64: 1, 4, 256>}, {pipeline_mode = #tpu.pipeline_mode<synchronous>, transform_indices = @transform_1, window_bounds = array<i64: 4, 1, 256>}, {pipeline_mode = #tpu.pipeline_mode<synchronous>, transform_indices = @transform_2, window_bounds = array<i64: 32, 4>}, {pipeline_mode = #tpu.pipeline_mode<synchronous>, transform_indices = @transform_3, window_bounds = array<i64: 32, 1>}, {pipeline_mode = #tpu.pipeline_mode<synchronous>, transform_indices = @transform_4, window_bounds = array<i64: 32, 1>}, {pipeline_mode = #tpu.pipeline_mode<synchronous>, transform_indices = @transform_5, window_bounds = array<i64: 32, 1>}, {pipeline_mode = #tpu.pipeline_mode<synchronous>, transform_indices = @transform_6, window_bounds = array<i64: 6, 8, 24>}, {pipeline_mode = #tpu.pipeline_mode<synchronous>, transform_indices = @transform_7, window_bounds = array<i64: 6, 8, 1>}, {pipeline_mode = #tpu.pipeline_mode<synchronous>, transform_indices = @transform_8, window_bounds = array<i64: 6, 8, 24>}, {pipeline_mode = #tpu.pipeline_mode<synchronous>, transform_indices = @transform_9, window_bounds = array<i64: 6, 8, 1>}, {pipeline_mode = #tpu.pipeline_mode<synchronous>, transform_indices = @transform_10, window_bounds = array<i64: 6, 8, 1>}, {pipeline_mode = #tpu.pipeline_mode<synchronous>, transform_indices = @transform_11, window_bounds = array<i64: 6, 8, 1>}, {pipeline_mode = #tpu.pipeline_mode<synchronous>, transform_indices = @transform_12, window_bounds = array<i64: 32, 1>}, {pipeline_mode = #tpu.pipeline_mode<synchronous>, transform_indices = @transform_13, window_bounds = array<i64: 32, 1>}, {transform_indices = @transform_14, window_bounds = array<i64: 1, 32, 256>}]} {
    %c0 = arith.constant 0 : index
    %c0_0 = arith.constant 0 : index
    %c0_1 = arith.constant 0 : index
    %0 = vector.load %arg1[%c0, %c0_0, %c0_1] : memref<1x4x256xf32, #tpu.memory_space<vmem>>, vector<1x4x256xf32>
    %1 = vector.shape_cast %0 : vector<1x4x256xf32> to vector<4x256xf32>
    %c0_2 = arith.constant 0 : index
    %c0_3 = arith.constant 0 : index
    %2 = vector.load %arg3[%c0_2, %c0_3] : memref<32x4xf32, #tpu.memory_space<vmem>>, vector<32x4xf32>
    %cst = arith.constant dense<0.000000e+00> : vector<32x256xf32>
    %3 = tpu.matmul %2, %1, %cst {dimension_numbers = #tpu.dot_dimension_numbers<[1], [0], [0], [1], [0, 0, 1, 1], [], []>} : vector<32x4xf32>, vector<4x256xf32>, vector<32x256xf32> -> vector<32x256xf32>
    %c0_4 = arith.constant 0 : index
    %c0_5 = arith.constant 0 : index
    %4 = vector.load %arg4[%c0_4, %c0_5] : memref<32x1xf32, #tpu.memory_space<vmem>>, vector<32x1xf32>
    %5 = vector.broadcast %4 : vector<32x1xf32> to vector<32x256xf32>
    %6 = arith.addf %3, %5 : vector<32x256xf32>
    %cst_6 = arith.constant 0.000000e+00 : f32
    %7 = vector.broadcast %cst_6 : f32 to vector<32x256xf32>
    %8 = arith.maximumf %6, %7 : vector<32x256xf32>
    %c0_7 = arith.constant 0 : index
    %c0_8 = arith.constant 0 : index
    %9 = vector.load %arg5[%c0_7, %c0_8] : memref<32x1xf32, #tpu.memory_space<vmem>>, vector<32x1xf32>
    %10 = vector.broadcast %9 : vector<32x1xf32> to vector<32x256xf32>
    %11 = arith.mulf %8, %10 : vector<32x256xf32>
    %c0_9 = arith.constant 0 : index
    %c0_10 = arith.constant 0 : index
    %12 = vector.load %arg6[%c0_9, %c0_10] : memref<32x1xf32, #tpu.memory_space<vmem>>, vector<32x1xf32>
    %13 = vector.broadcast %12 : vector<32x1xf32> to vector<32x256xf32>
    %14 = arith.addf %11, %13 : vector<32x256xf32>
    %c0_11 = arith.constant 0 : index
    %c0_12 = arith.constant 0 : index
    %c0_13 = arith.constant 0 : index
    %15 = vector.load %arg2[%c0_11, %c0_12, %c0_13] : memref<4x1x256xf32, #tpu.memory_space<vmem>>, vector<1x1x256xf32>
    %16 = vector.shape_cast %15 : vector<1x1x256xf32> to vector<1x256xf32>
    %c1 = arith.constant 1 : index
    %c0_14 = arith.constant 0 : index
    %c0_15 = arith.constant 0 : index
    %17 = vector.load %arg2[%c1, %c0_14, %c0_15] : memref<4x1x256xf32, #tpu.memory_space<vmem>>, vector<1x1x256xf32>
    %18 = vector.shape_cast %17 : vector<1x1x256xf32> to vector<1x256xf32>
    %c2 = arith.constant 2 : index
    %c0_16 = arith.constant 0 : index
    %c0_17 = arith.constant 0 : index
    %19 = vector.load %arg2[%c2, %c0_16, %c0_17] : memref<4x1x256xf32, #tpu.memory_space<vmem>>, vector<1x1x256xf32>
    %20 = vector.shape_cast %19 : vector<1x1x256xf32> to vector<1x256xf32>
    %c3 = arith.constant 3 : index
    %c0_18 = arith.constant 0 : index
    %c0_19 = arith.constant 0 : index
    %21 = vector.load %arg2[%c3, %c0_18, %c0_19] : memref<4x1x256xf32, #tpu.memory_space<vmem>>, vector<1x1x256xf32>
    %22 = vector.shape_cast %21 : vector<1x1x256xf32> to vector<1x256xf32>
    %23 = vector.extract_strided_slice %14 {offsets = [0, 0], sizes = [8, 256], strides = [1, 1]} : vector<32x256xf32> to vector<8x256xf32>
    %c0_20 = arith.constant 0 : index
    %c0_21 = arith.constant 0 : index
    %c0_22 = arith.constant 0 : index
    %24 = vector.load %arg7[%c0_20, %c0_21, %c0_22] : memref<6x8x24xf32, #tpu.memory_space<vmem>>, vector<1x8x24xf32>
    %25 = vector.shape_cast %24 : vector<1x8x24xf32> to vector<8x24xf32>
    %c16_i32 = arith.constant 16 : i32
    %26 = tpu.dynamic_rotate %23 by %c16_i32 dim 1 : vector<8x256xf32>, i32 -> vector<8x256xf32>
    %27 = vector.broadcast %16 : vector<1x256xf32> to vector<8x256xf32>
    %28 = arith.mulf %26, %27 : vector<8x256xf32>
    %c240_i32 = arith.constant 240 : i32
    %29 = tpu.dynamic_rotate %23 by %c240_i32 dim 1 : vector<8x256xf32>, i32 -> vector<8x256xf32>
    %30 = vector.broadcast %18 : vector<1x256xf32> to vector<8x256xf32>
    %31 = arith.mulf %29, %30 : vector<8x256xf32>
    %32 = tpu.concatenate %28, %23, %31 in 0 : vector<8x256xf32>, vector<8x256xf32>, vector<8x256xf32> -> vector<24x256xf32>
    %cst_23 = arith.constant dense<0.000000e+00> : vector<8x256xf32>
    %33 = tpu.matmul %25, %32, %cst_23 {dimension_numbers = #tpu.dot_dimension_numbers<[1], [0], [0], [1], [0, 0, 1, 1], [], []>} : vector<8x24xf32>, vector<24x256xf32>, vector<8x256xf32> -> vector<8x256xf32>
    %c0_24 = arith.constant 0 : index
    %c0_25 = arith.constant 0 : index
    %c0_26 = arith.constant 0 : index
    %34 = vector.load %arg8[%c0_24, %c0_25, %c0_26] : memref<6x8x1xf32, #tpu.memory_space<vmem>>, vector<1x8x1xf32>
    %35 = vector.shape_cast %34 : vector<1x8x1xf32> to vector<8x1xf32>
    %36 = vector.broadcast %35 : vector<8x1xf32> to vector<8x256xf32>
    %37 = arith.addf %33, %36 : vector<8x256xf32>
    %cst_27 = arith.constant 0.000000e+00 : f32
    %38 = vector.broadcast %cst_27 : f32 to vector<8x256xf32>
    %39 = arith.maximumf %37, %38 : vector<8x256xf32>
    %c0_28 = arith.constant 0 : index
    %c0_29 = arith.constant 0 : index
    %c0_30 = arith.constant 0 : index
    %40 = vector.load %arg9[%c0_28, %c0_29, %c0_30] : memref<6x8x24xf32, #tpu.memory_space<vmem>>, vector<1x8x24xf32>
    %41 = vector.shape_cast %40 : vector<1x8x24xf32> to vector<8x24xf32>
    %c1_i32 = arith.constant 1 : i32
    %42 = tpu.dynamic_rotate %39 by %c1_i32 dim 1 : vector<8x256xf32>, i32 -> vector<8x256xf32>
    %43 = vector.broadcast %20 : vector<1x256xf32> to vector<8x256xf32>
    %44 = arith.mulf %42, %43 : vector<8x256xf32>
    %c255_i32 = arith.constant 255 : i32
    %45 = tpu.dynamic_rotate %39 by %c255_i32 dim 1 : vector<8x256xf32>, i32 -> vector<8x256xf32>
    %46 = vector.broadcast %22 : vector<1x256xf32> to vector<8x256xf32>
    %47 = arith.mulf %45, %46 : vector<8x256xf32>
    %48 = tpu.concatenate %44, %39, %47 in 0 : vector<8x256xf32>, vector<8x256xf32>, vector<8x256xf32> -> vector<24x256xf32>
    %cst_31 = arith.constant dense<0.000000e+00> : vector<8x256xf32>
    %49 = tpu.matmul %41, %48, %cst_31 {dimension_numbers = #tpu.dot_dimension_numbers<[1], [0], [0], [1], [0, 0, 1, 1], [], []>} : vector<8x24xf32>, vector<24x256xf32>, vector<8x256xf32> -> vector<8x256xf32>
    %c0_32 = arith.constant 0 : index
    %c0_33 = arith.constant 0 : index
    %c0_34 = arith.constant 0 : index
    %50 = vector.load %arg10[%c0_32, %c0_33, %c0_34] : memref<6x8x1xf32, #tpu.memory_space<vmem>>, vector<1x8x1xf32>
    %51 = vector.shape_cast %50 : vector<1x8x1xf32> to vector<8x1xf32>
    %52 = vector.broadcast %51 : vector<8x1xf32> to vector<8x256xf32>
    %53 = arith.addf %49, %52 : vector<8x256xf32>
    %cst_35 = arith.constant 0.000000e+00 : f32
    %54 = vector.broadcast %cst_35 : f32 to vector<8x256xf32>
    %55 = arith.maximumf %53, %54 : vector<8x256xf32>
    %c0_36 = arith.constant 0 : index
    %c0_37 = arith.constant 0 : index
    %c0_38 = arith.constant 0 : index
    %56 = vector.load %arg11[%c0_36, %c0_37, %c0_38] : memref<6x8x1xf32, #tpu.memory_space<vmem>>, vector<1x8x1xf32>
    %57 = vector.shape_cast %56 : vector<1x8x1xf32> to vector<8x1xf32>
    %58 = vector.broadcast %57 : vector<8x1xf32> to vector<8x256xf32>
    %59 = arith.mulf %55, %58 : vector<8x256xf32>
    %c0_39 = arith.constant 0 : index
    %c0_40 = arith.constant 0 : index
    %c0_41 = arith.constant 0 : index
    %60 = vector.load %arg12[%c0_39, %c0_40, %c0_41] : memref<6x8x1xf32, #tpu.memory_space<vmem>>, vector<1x8x1xf32>
    %61 = vector.shape_cast %60 : vector<1x8x1xf32> to vector<8x1xf32>
    %62 = vector.broadcast %61 : vector<8x1xf32> to vector<8x256xf32>
    %63 = arith.addf %59, %62 : vector<8x256xf32>
    %c1_42 = arith.constant 1 : index
    %c0_43 = arith.constant 0 : index
    %c0_44 = arith.constant 0 : index
    %64 = vector.load %arg7[%c1_42, %c0_43, %c0_44] : memref<6x8x24xf32, #tpu.memory_space<vmem>>, vector<1x8x24xf32>
    %65 = vector.shape_cast %64 : vector<1x8x24xf32> to vector<8x24xf32>
    %c16_i32_45 = arith.constant 16 : i32
    %66 = tpu.dynamic_rotate %63 by %c16_i32_45 dim 1 : vector<8x256xf32>, i32 -> vector<8x256xf32>
    %67 = vector.broadcast %16 : vector<1x256xf32> to vector<8x256xf32>
    %68 = arith.mulf %66, %67 : vector<8x256xf32>
    %c240_i32_46 = arith.constant 240 : i32
    %69 = tpu.dynamic_rotate %63 by %c240_i32_46 dim 1 : vector<8x256xf32>, i32 -> vector<8x256xf32>
    %70 = vector.broadcast %18 : vector<1x256xf32> to vector<8x256xf32>
    %71 = arith.mulf %69, %70 : vector<8x256xf32>
    %72 = tpu.concatenate %68, %63, %71 in 0 : vector<8x256xf32>, vector<8x256xf32>, vector<8x256xf32> -> vector<24x256xf32>
    %cst_47 = arith.constant dense<0.000000e+00> : vector<8x256xf32>
    %73 = tpu.matmul %65, %72, %cst_47 {dimension_numbers = #tpu.dot_dimension_numbers<[1], [0], [0], [1], [0, 0, 1, 1], [], []>} : vector<8x24xf32>, vector<24x256xf32>, vector<8x256xf32> -> vector<8x256xf32>
    %c1_48 = arith.constant 1 : index
    %c0_49 = arith.constant 0 : index
    %c0_50 = arith.constant 0 : index
    %74 = vector.load %arg8[%c1_48, %c0_49, %c0_50] : memref<6x8x1xf32, #tpu.memory_space<vmem>>, vector<1x8x1xf32>
    %75 = vector.shape_cast %74 : vector<1x8x1xf32> to vector<8x1xf32>
    %76 = vector.broadcast %75 : vector<8x1xf32> to vector<8x256xf32>
    %77 = arith.addf %73, %76 : vector<8x256xf32>
    %cst_51 = arith.constant 0.000000e+00 : f32
    %78 = vector.broadcast %cst_51 : f32 to vector<8x256xf32>
    %79 = arith.maximumf %77, %78 : vector<8x256xf32>
    %c1_52 = arith.constant 1 : index
    %c0_53 = arith.constant 0 : index
    %c0_54 = arith.constant 0 : index
    %80 = vector.load %arg9[%c1_52, %c0_53, %c0_54] : memref<6x8x24xf32, #tpu.memory_space<vmem>>, vector<1x8x24xf32>
    %81 = vector.shape_cast %80 : vector<1x8x24xf32> to vector<8x24xf32>
    %c1_i32_55 = arith.constant 1 : i32
    %82 = tpu.dynamic_rotate %79 by %c1_i32_55 dim 1 : vector<8x256xf32>, i32 -> vector<8x256xf32>
    %83 = vector.broadcast %20 : vector<1x256xf32> to vector<8x256xf32>
    %84 = arith.mulf %82, %83 : vector<8x256xf32>
    %c255_i32_56 = arith.constant 255 : i32
    %85 = tpu.dynamic_rotate %79 by %c255_i32_56 dim 1 : vector<8x256xf32>, i32 -> vector<8x256xf32>
    %86 = vector.broadcast %22 : vector<1x256xf32> to vector<8x256xf32>
    %87 = arith.mulf %85, %86 : vector<8x256xf32>
    %88 = tpu.concatenate %84, %79, %87 in 0 : vector<8x256xf32>, vector<8x256xf32>, vector<8x256xf32> -> vector<24x256xf32>
    %cst_57 = arith.constant dense<0.000000e+00> : vector<8x256xf32>
    %89 = tpu.matmul %81, %88, %cst_57 {dimension_numbers = #tpu.dot_dimension_numbers<[1], [0], [0], [1], [0, 0, 1, 1], [], []>} : vector<8x24xf32>, vector<24x256xf32>, vector<8x256xf32> -> vector<8x256xf32>
    %c1_58 = arith.constant 1 : index
    %c0_59 = arith.constant 0 : index
    %c0_60 = arith.constant 0 : index
    %90 = vector.load %arg10[%c1_58, %c0_59, %c0_60] : memref<6x8x1xf32, #tpu.memory_space<vmem>>, vector<1x8x1xf32>
    %91 = vector.shape_cast %90 : vector<1x8x1xf32> to vector<8x1xf32>
    %92 = vector.broadcast %91 : vector<8x1xf32> to vector<8x256xf32>
    %93 = arith.addf %89, %92 : vector<8x256xf32>
    %cst_61 = arith.constant 0.000000e+00 : f32
    %94 = vector.broadcast %cst_61 : f32 to vector<8x256xf32>
    %95 = arith.maximumf %93, %94 : vector<8x256xf32>
    %c1_62 = arith.constant 1 : index
    %c0_63 = arith.constant 0 : index
    %c0_64 = arith.constant 0 : index
    %96 = vector.load %arg11[%c1_62, %c0_63, %c0_64] : memref<6x8x1xf32, #tpu.memory_space<vmem>>, vector<1x8x1xf32>
    %97 = vector.shape_cast %96 : vector<1x8x1xf32> to vector<8x1xf32>
    %98 = vector.broadcast %97 : vector<8x1xf32> to vector<8x256xf32>
    %99 = arith.mulf %95, %98 : vector<8x256xf32>
    %c1_65 = arith.constant 1 : index
    %c0_66 = arith.constant 0 : index
    %c0_67 = arith.constant 0 : index
    %100 = vector.load %arg12[%c1_65, %c0_66, %c0_67] : memref<6x8x1xf32, #tpu.memory_space<vmem>>, vector<1x8x1xf32>
    %101 = vector.shape_cast %100 : vector<1x8x1xf32> to vector<8x1xf32>
    %102 = vector.broadcast %101 : vector<8x1xf32> to vector<8x256xf32>
    %103 = arith.addf %99, %102 : vector<8x256xf32>
    %104 = vector.extract_strided_slice %14 {offsets = [8, 0], sizes = [8, 256], strides = [1, 1]} : vector<32x256xf32> to vector<8x256xf32>
    %c2_68 = arith.constant 2 : index
    %c0_69 = arith.constant 0 : index
    %c0_70 = arith.constant 0 : index
    %105 = vector.load %arg7[%c2_68, %c0_69, %c0_70] : memref<6x8x24xf32, #tpu.memory_space<vmem>>, vector<1x8x24xf32>
    %106 = vector.shape_cast %105 : vector<1x8x24xf32> to vector<8x24xf32>
    %c16_i32_71 = arith.constant 16 : i32
    %107 = tpu.dynamic_rotate %104 by %c16_i32_71 dim 1 : vector<8x256xf32>, i32 -> vector<8x256xf32>
    %108 = vector.broadcast %16 : vector<1x256xf32> to vector<8x256xf32>
    %109 = arith.mulf %107, %108 : vector<8x256xf32>
    %c240_i32_72 = arith.constant 240 : i32
    %110 = tpu.dynamic_rotate %104 by %c240_i32_72 dim 1 : vector<8x256xf32>, i32 -> vector<8x256xf32>
    %111 = vector.broadcast %18 : vector<1x256xf32> to vector<8x256xf32>
    %112 = arith.mulf %110, %111 : vector<8x256xf32>
    %113 = tpu.concatenate %109, %104, %112 in 0 : vector<8x256xf32>, vector<8x256xf32>, vector<8x256xf32> -> vector<24x256xf32>
    %cst_73 = arith.constant dense<0.000000e+00> : vector<8x256xf32>
    %114 = tpu.matmul %106, %113, %cst_73 {dimension_numbers = #tpu.dot_dimension_numbers<[1], [0], [0], [1], [0, 0, 1, 1], [], []>} : vector<8x24xf32>, vector<24x256xf32>, vector<8x256xf32> -> vector<8x256xf32>
    %c2_74 = arith.constant 2 : index
    %c0_75 = arith.constant 0 : index
    %c0_76 = arith.constant 0 : index
    %115 = vector.load %arg8[%c2_74, %c0_75, %c0_76] : memref<6x8x1xf32, #tpu.memory_space<vmem>>, vector<1x8x1xf32>
    %116 = vector.shape_cast %115 : vector<1x8x1xf32> to vector<8x1xf32>
    %117 = vector.broadcast %116 : vector<8x1xf32> to vector<8x256xf32>
    %118 = arith.addf %114, %117 : vector<8x256xf32>
    %cst_77 = arith.constant 0.000000e+00 : f32
    %119 = vector.broadcast %cst_77 : f32 to vector<8x256xf32>
    %120 = arith.maximumf %118, %119 : vector<8x256xf32>
    %c2_78 = arith.constant 2 : index
    %c0_79 = arith.constant 0 : index
    %c0_80 = arith.constant 0 : index
    %121 = vector.load %arg9[%c2_78, %c0_79, %c0_80] : memref<6x8x24xf32, #tpu.memory_space<vmem>>, vector<1x8x24xf32>
    %122 = vector.shape_cast %121 : vector<1x8x24xf32> to vector<8x24xf32>
    %c1_i32_81 = arith.constant 1 : i32
    %123 = tpu.dynamic_rotate %120 by %c1_i32_81 dim 1 : vector<8x256xf32>, i32 -> vector<8x256xf32>
    %124 = vector.broadcast %20 : vector<1x256xf32> to vector<8x256xf32>
    %125 = arith.mulf %123, %124 : vector<8x256xf32>
    %c255_i32_82 = arith.constant 255 : i32
    %126 = tpu.dynamic_rotate %120 by %c255_i32_82 dim 1 : vector<8x256xf32>, i32 -> vector<8x256xf32>
    %127 = vector.broadcast %22 : vector<1x256xf32> to vector<8x256xf32>
    %128 = arith.mulf %126, %127 : vector<8x256xf32>
    %129 = tpu.concatenate %125, %120, %128 in 0 : vector<8x256xf32>, vector<8x256xf32>, vector<8x256xf32> -> vector<24x256xf32>
    %cst_83 = arith.constant dense<0.000000e+00> : vector<8x256xf32>
    %130 = tpu.matmul %122, %129, %cst_83 {dimension_numbers = #tpu.dot_dimension_numbers<[1], [0], [0], [1], [0, 0, 1, 1], [], []>} : vector<8x24xf32>, vector<24x256xf32>, vector<8x256xf32> -> vector<8x256xf32>
    %c2_84 = arith.constant 2 : index
    %c0_85 = arith.constant 0 : index
    %c0_86 = arith.constant 0 : index
    %131 = vector.load %arg10[%c2_84, %c0_85, %c0_86] : memref<6x8x1xf32, #tpu.memory_space<vmem>>, vector<1x8x1xf32>
    %132 = vector.shape_cast %131 : vector<1x8x1xf32> to vector<8x1xf32>
    %133 = vector.broadcast %132 : vector<8x1xf32> to vector<8x256xf32>
    %134 = arith.addf %130, %133 : vector<8x256xf32>
    %cst_87 = arith.constant 0.000000e+00 : f32
    %135 = vector.broadcast %cst_87 : f32 to vector<8x256xf32>
    %136 = arith.maximumf %134, %135 : vector<8x256xf32>
    %c2_88 = arith.constant 2 : index
    %c0_89 = arith.constant 0 : index
    %c0_90 = arith.constant 0 : index
    %137 = vector.load %arg11[%c2_88, %c0_89, %c0_90] : memref<6x8x1xf32, #tpu.memory_space<vmem>>, vector<1x8x1xf32>
    %138 = vector.shape_cast %137 : vector<1x8x1xf32> to vector<8x1xf32>
    %139 = vector.broadcast %138 : vector<8x1xf32> to vector<8x256xf32>
    %140 = arith.mulf %136, %139 : vector<8x256xf32>
    %c2_91 = arith.constant 2 : index
    %c0_92 = arith.constant 0 : index
    %c0_93 = arith.constant 0 : index
    %141 = vector.load %arg12[%c2_91, %c0_92, %c0_93] : memref<6x8x1xf32, #tpu.memory_space<vmem>>, vector<1x8x1xf32>
    %142 = vector.shape_cast %141 : vector<1x8x1xf32> to vector<8x1xf32>
    %143 = vector.broadcast %142 : vector<8x1xf32> to vector<8x256xf32>
    %144 = arith.addf %140, %143 : vector<8x256xf32>
    %145 = vector.extract_strided_slice %14 {offsets = [16, 0], sizes = [8, 256], strides = [1, 1]} : vector<32x256xf32> to vector<8x256xf32>
    %146 = vector.extract_strided_slice %14 {offsets = [24, 0], sizes = [8, 256], strides = [1, 1]} : vector<32x256xf32> to vector<8x256xf32>
    %c3_94 = arith.constant 3 : index
    %c0_95 = arith.constant 0 : index
    %c0_96 = arith.constant 0 : index
    %147 = vector.load %arg7[%c3_94, %c0_95, %c0_96] : memref<6x8x24xf32, #tpu.memory_space<vmem>>, vector<1x8x24xf32>
    %148 = vector.shape_cast %147 : vector<1x8x24xf32> to vector<8x24xf32>
    %c16_i32_97 = arith.constant 16 : i32
    %149 = tpu.dynamic_rotate %146 by %c16_i32_97 dim 1 : vector<8x256xf32>, i32 -> vector<8x256xf32>
    %150 = vector.broadcast %16 : vector<1x256xf32> to vector<8x256xf32>
    %151 = arith.mulf %149, %150 : vector<8x256xf32>
    %c240_i32_98 = arith.constant 240 : i32
    %152 = tpu.dynamic_rotate %146 by %c240_i32_98 dim 1 : vector<8x256xf32>, i32 -> vector<8x256xf32>
    %153 = vector.broadcast %18 : vector<1x256xf32> to vector<8x256xf32>
    %154 = arith.mulf %152, %153 : vector<8x256xf32>
    %155 = tpu.concatenate %151, %146, %154 in 0 : vector<8x256xf32>, vector<8x256xf32>, vector<8x256xf32> -> vector<24x256xf32>
    %cst_99 = arith.constant dense<0.000000e+00> : vector<8x256xf32>
    %156 = tpu.matmul %148, %155, %cst_99 {dimension_numbers = #tpu.dot_dimension_numbers<[1], [0], [0], [1], [0, 0, 1, 1], [], []>} : vector<8x24xf32>, vector<24x256xf32>, vector<8x256xf32> -> vector<8x256xf32>
    %c3_100 = arith.constant 3 : index
    %c0_101 = arith.constant 0 : index
    %c0_102 = arith.constant 0 : index
    %157 = vector.load %arg8[%c3_100, %c0_101, %c0_102] : memref<6x8x1xf32, #tpu.memory_space<vmem>>, vector<1x8x1xf32>
    %158 = vector.shape_cast %157 : vector<1x8x1xf32> to vector<8x1xf32>
    %159 = vector.broadcast %158 : vector<8x1xf32> to vector<8x256xf32>
    %160 = arith.addf %156, %159 : vector<8x256xf32>
    %cst_103 = arith.constant 0.000000e+00 : f32
    %161 = vector.broadcast %cst_103 : f32 to vector<8x256xf32>
    %162 = arith.maximumf %160, %161 : vector<8x256xf32>
    %c3_104 = arith.constant 3 : index
    %c0_105 = arith.constant 0 : index
    %c0_106 = arith.constant 0 : index
    %163 = vector.load %arg9[%c3_104, %c0_105, %c0_106] : memref<6x8x24xf32, #tpu.memory_space<vmem>>, vector<1x8x24xf32>
    %164 = vector.shape_cast %163 : vector<1x8x24xf32> to vector<8x24xf32>
    %c1_i32_107 = arith.constant 1 : i32
    %165 = tpu.dynamic_rotate %162 by %c1_i32_107 dim 1 : vector<8x256xf32>, i32 -> vector<8x256xf32>
    %166 = vector.broadcast %20 : vector<1x256xf32> to vector<8x256xf32>
    %167 = arith.mulf %165, %166 : vector<8x256xf32>
    %c255_i32_108 = arith.constant 255 : i32
    %168 = tpu.dynamic_rotate %162 by %c255_i32_108 dim 1 : vector<8x256xf32>, i32 -> vector<8x256xf32>
    %169 = vector.broadcast %22 : vector<1x256xf32> to vector<8x256xf32>
    %170 = arith.mulf %168, %169 : vector<8x256xf32>
    %171 = tpu.concatenate %167, %162, %170 in 0 : vector<8x256xf32>, vector<8x256xf32>, vector<8x256xf32> -> vector<24x256xf32>
    %cst_109 = arith.constant dense<0.000000e+00> : vector<8x256xf32>
    %172 = tpu.matmul %164, %171, %cst_109 {dimension_numbers = #tpu.dot_dimension_numbers<[1], [0], [0], [1], [0, 0, 1, 1], [], []>} : vector<8x24xf32>, vector<24x256xf32>, vector<8x256xf32> -> vector<8x256xf32>
    %c3_110 = arith.constant 3 : index
    %c0_111 = arith.constant 0 : index
    %c0_112 = arith.constant 0 : index
    %173 = vector.load %arg10[%c3_110, %c0_111, %c0_112] : memref<6x8x1xf32, #tpu.memory_space<vmem>>, vector<1x8x1xf32>
    %174 = vector.shape_cast %173 : vector<1x8x1xf32> to vector<8x1xf32>
    %175 = vector.broadcast %174 : vector<8x1xf32> to vector<8x256xf32>
    %176 = arith.addf %172, %175 : vector<8x256xf32>
    %cst_113 = arith.constant 0.000000e+00 : f32
    %177 = vector.broadcast %cst_113 : f32 to vector<8x256xf32>
    %178 = arith.maximumf %176, %177 : vector<8x256xf32>
    %c3_114 = arith.constant 3 : index
    %c0_115 = arith.constant 0 : index
    %c0_116 = arith.constant 0 : index
    %179 = vector.load %arg11[%c3_114, %c0_115, %c0_116] : memref<6x8x1xf32, #tpu.memory_space<vmem>>, vector<1x8x1xf32>
    %180 = vector.shape_cast %179 : vector<1x8x1xf32> to vector<8x1xf32>
    %181 = vector.broadcast %180 : vector<8x1xf32> to vector<8x256xf32>
    %182 = arith.mulf %178, %181 : vector<8x256xf32>
    %c3_117 = arith.constant 3 : index
    %c0_118 = arith.constant 0 : index
    %c0_119 = arith.constant 0 : index
    %183 = vector.load %arg12[%c3_117, %c0_118, %c0_119] : memref<6x8x1xf32, #tpu.memory_space<vmem>>, vector<1x8x1xf32>
    %184 = vector.shape_cast %183 : vector<1x8x1xf32> to vector<8x1xf32>
    %185 = vector.broadcast %184 : vector<8x1xf32> to vector<8x256xf32>
    %186 = arith.addf %182, %185 : vector<8x256xf32>
    %c4 = arith.constant 4 : index
    %c0_120 = arith.constant 0 : index
    %c0_121 = arith.constant 0 : index
    %187 = vector.load %arg7[%c4, %c0_120, %c0_121] : memref<6x8x24xf32, #tpu.memory_space<vmem>>, vector<1x8x24xf32>
    %188 = vector.shape_cast %187 : vector<1x8x24xf32> to vector<8x24xf32>
    %c16_i32_122 = arith.constant 16 : i32
    %189 = tpu.dynamic_rotate %186 by %c16_i32_122 dim 1 : vector<8x256xf32>, i32 -> vector<8x256xf32>
    %190 = vector.broadcast %16 : vector<1x256xf32> to vector<8x256xf32>
    %191 = arith.mulf %189, %190 : vector<8x256xf32>
    %c240_i32_123 = arith.constant 240 : i32
    %192 = tpu.dynamic_rotate %186 by %c240_i32_123 dim 1 : vector<8x256xf32>, i32 -> vector<8x256xf32>
    %193 = vector.broadcast %18 : vector<1x256xf32> to vector<8x256xf32>
    %194 = arith.mulf %192, %193 : vector<8x256xf32>
    %195 = tpu.concatenate %191, %186, %194 in 0 : vector<8x256xf32>, vector<8x256xf32>, vector<8x256xf32> -> vector<24x256xf32>
    %cst_124 = arith.constant dense<0.000000e+00> : vector<8x256xf32>
    %196 = tpu.matmul %188, %195, %cst_124 {dimension_numbers = #tpu.dot_dimension_numbers<[1], [0], [0], [1], [0, 0, 1, 1], [], []>} : vector<8x24xf32>, vector<24x256xf32>, vector<8x256xf32> -> vector<8x256xf32>
    %c4_125 = arith.constant 4 : index
    %c0_126 = arith.constant 0 : index
    %c0_127 = arith.constant 0 : index
    %197 = vector.load %arg8[%c4_125, %c0_126, %c0_127] : memref<6x8x1xf32, #tpu.memory_space<vmem>>, vector<1x8x1xf32>
    %198 = vector.shape_cast %197 : vector<1x8x1xf32> to vector<8x1xf32>
    %199 = vector.broadcast %198 : vector<8x1xf32> to vector<8x256xf32>
    %200 = arith.addf %196, %199 : vector<8x256xf32>
    %cst_128 = arith.constant 0.000000e+00 : f32
    %201 = vector.broadcast %cst_128 : f32 to vector<8x256xf32>
    %202 = arith.maximumf %200, %201 : vector<8x256xf32>
    %c4_129 = arith.constant 4 : index
    %c0_130 = arith.constant 0 : index
    %c0_131 = arith.constant 0 : index
    %203 = vector.load %arg9[%c4_129, %c0_130, %c0_131] : memref<6x8x24xf32, #tpu.memory_space<vmem>>, vector<1x8x24xf32>
    %204 = vector.shape_cast %203 : vector<1x8x24xf32> to vector<8x24xf32>
    %c1_i32_132 = arith.constant 1 : i32
    %205 = tpu.dynamic_rotate %202 by %c1_i32_132 dim 1 : vector<8x256xf32>, i32 -> vector<8x256xf32>
    %206 = vector.broadcast %20 : vector<1x256xf32> to vector<8x256xf32>
    %207 = arith.mulf %205, %206 : vector<8x256xf32>
    %c255_i32_133 = arith.constant 255 : i32
    %208 = tpu.dynamic_rotate %202 by %c255_i32_133 dim 1 : vector<8x256xf32>, i32 -> vector<8x256xf32>
    %209 = vector.broadcast %22 : vector<1x256xf32> to vector<8x256xf32>
    %210 = arith.mulf %208, %209 : vector<8x256xf32>
    %211 = tpu.concatenate %207, %202, %210 in 0 : vector<8x256xf32>, vector<8x256xf32>, vector<8x256xf32> -> vector<24x256xf32>
    %cst_134 = arith.constant dense<0.000000e+00> : vector<8x256xf32>
    %212 = tpu.matmul %204, %211, %cst_134 {dimension_numbers = #tpu.dot_dimension_numbers<[1], [0], [0], [1], [0, 0, 1, 1], [], []>} : vector<8x24xf32>, vector<24x256xf32>, vector<8x256xf32> -> vector<8x256xf32>
    %c4_135 = arith.constant 4 : index
    %c0_136 = arith.constant 0 : index
    %c0_137 = arith.constant 0 : index
    %213 = vector.load %arg10[%c4_135, %c0_136, %c0_137] : memref<6x8x1xf32, #tpu.memory_space<vmem>>, vector<1x8x1xf32>
    %214 = vector.shape_cast %213 : vector<1x8x1xf32> to vector<8x1xf32>
    %215 = vector.broadcast %214 : vector<8x1xf32> to vector<8x256xf32>
    %216 = arith.addf %212, %215 : vector<8x256xf32>
    %cst_138 = arith.constant 0.000000e+00 : f32
    %217 = vector.broadcast %cst_138 : f32 to vector<8x256xf32>
    %218 = arith.maximumf %216, %217 : vector<8x256xf32>
    %c4_139 = arith.constant 4 : index
    %c0_140 = arith.constant 0 : index
    %c0_141 = arith.constant 0 : index
    %219 = vector.load %arg11[%c4_139, %c0_140, %c0_141] : memref<6x8x1xf32, #tpu.memory_space<vmem>>, vector<1x8x1xf32>
    %220 = vector.shape_cast %219 : vector<1x8x1xf32> to vector<8x1xf32>
    %221 = vector.broadcast %220 : vector<8x1xf32> to vector<8x256xf32>
    %222 = arith.mulf %218, %221 : vector<8x256xf32>
    %c4_142 = arith.constant 4 : index
    %c0_143 = arith.constant 0 : index
    %c0_144 = arith.constant 0 : index
    %223 = vector.load %arg12[%c4_142, %c0_143, %c0_144] : memref<6x8x1xf32, #tpu.memory_space<vmem>>, vector<1x8x1xf32>
    %224 = vector.shape_cast %223 : vector<1x8x1xf32> to vector<8x1xf32>
    %225 = vector.broadcast %224 : vector<8x1xf32> to vector<8x256xf32>
    %226 = arith.addf %222, %225 : vector<8x256xf32>
    %c5 = arith.constant 5 : index
    %c0_145 = arith.constant 0 : index
    %c0_146 = arith.constant 0 : index
    %227 = vector.load %arg7[%c5, %c0_145, %c0_146] : memref<6x8x24xf32, #tpu.memory_space<vmem>>, vector<1x8x24xf32>
    %228 = vector.shape_cast %227 : vector<1x8x24xf32> to vector<8x24xf32>
    %c16_i32_147 = arith.constant 16 : i32
    %229 = tpu.dynamic_rotate %226 by %c16_i32_147 dim 1 : vector<8x256xf32>, i32 -> vector<8x256xf32>
    %230 = vector.broadcast %16 : vector<1x256xf32> to vector<8x256xf32>
    %231 = arith.mulf %229, %230 : vector<8x256xf32>
    %c240_i32_148 = arith.constant 240 : i32
    %232 = tpu.dynamic_rotate %226 by %c240_i32_148 dim 1 : vector<8x256xf32>, i32 -> vector<8x256xf32>
    %233 = vector.broadcast %18 : vector<1x256xf32> to vector<8x256xf32>
    %234 = arith.mulf %232, %233 : vector<8x256xf32>
    %235 = tpu.concatenate %231, %226, %234 in 0 : vector<8x256xf32>, vector<8x256xf32>, vector<8x256xf32> -> vector<24x256xf32>
    %cst_149 = arith.constant dense<0.000000e+00> : vector<8x256xf32>
    %236 = tpu.matmul %228, %235, %cst_149 {dimension_numbers = #tpu.dot_dimension_numbers<[1], [0], [0], [1], [0, 0, 1, 1], [], []>} : vector<8x24xf32>, vector<24x256xf32>, vector<8x256xf32> -> vector<8x256xf32>
    %c5_150 = arith.constant 5 : index
    %c0_151 = arith.constant 0 : index
    %c0_152 = arith.constant 0 : index
    %237 = vector.load %arg8[%c5_150, %c0_151, %c0_152] : memref<6x8x1xf32, #tpu.memory_space<vmem>>, vector<1x8x1xf32>
    %238 = vector.shape_cast %237 : vector<1x8x1xf32> to vector<8x1xf32>
    %239 = vector.broadcast %238 : vector<8x1xf32> to vector<8x256xf32>
    %240 = arith.addf %236, %239 : vector<8x256xf32>
    %cst_153 = arith.constant 0.000000e+00 : f32
    %241 = vector.broadcast %cst_153 : f32 to vector<8x256xf32>
    %242 = arith.maximumf %240, %241 : vector<8x256xf32>
    %c5_154 = arith.constant 5 : index
    %c0_155 = arith.constant 0 : index
    %c0_156 = arith.constant 0 : index
    %243 = vector.load %arg9[%c5_154, %c0_155, %c0_156] : memref<6x8x24xf32, #tpu.memory_space<vmem>>, vector<1x8x24xf32>
    %244 = vector.shape_cast %243 : vector<1x8x24xf32> to vector<8x24xf32>
    %c1_i32_157 = arith.constant 1 : i32
    %245 = tpu.dynamic_rotate %242 by %c1_i32_157 dim 1 : vector<8x256xf32>, i32 -> vector<8x256xf32>
    %246 = vector.broadcast %20 : vector<1x256xf32> to vector<8x256xf32>
    %247 = arith.mulf %245, %246 : vector<8x256xf32>
    %c255_i32_158 = arith.constant 255 : i32
    %248 = tpu.dynamic_rotate %242 by %c255_i32_158 dim 1 : vector<8x256xf32>, i32 -> vector<8x256xf32>
    %249 = vector.broadcast %22 : vector<1x256xf32> to vector<8x256xf32>
    %250 = arith.mulf %248, %249 : vector<8x256xf32>
    %251 = tpu.concatenate %247, %242, %250 in 0 : vector<8x256xf32>, vector<8x256xf32>, vector<8x256xf32> -> vector<24x256xf32>
    %cst_159 = arith.constant dense<0.000000e+00> : vector<8x256xf32>
    %252 = tpu.matmul %244, %251, %cst_159 {dimension_numbers = #tpu.dot_dimension_numbers<[1], [0], [0], [1], [0, 0, 1, 1], [], []>} : vector<8x24xf32>, vector<24x256xf32>, vector<8x256xf32> -> vector<8x256xf32>
    %c5_160 = arith.constant 5 : index
    %c0_161 = arith.constant 0 : index
    %c0_162 = arith.constant 0 : index
    %253 = vector.load %arg10[%c5_160, %c0_161, %c0_162] : memref<6x8x1xf32, #tpu.memory_space<vmem>>, vector<1x8x1xf32>
    %254 = vector.shape_cast %253 : vector<1x8x1xf32> to vector<8x1xf32>
    %255 = vector.broadcast %254 : vector<8x1xf32> to vector<8x256xf32>
    %256 = arith.addf %252, %255 : vector<8x256xf32>
    %cst_163 = arith.constant 0.000000e+00 : f32
    %257 = vector.broadcast %cst_163 : f32 to vector<8x256xf32>
    %258 = arith.maximumf %256, %257 : vector<8x256xf32>
    %c5_164 = arith.constant 5 : index
    %c0_165 = arith.constant 0 : index
    %c0_166 = arith.constant 0 : index
    %259 = vector.load %arg11[%c5_164, %c0_165, %c0_166] : memref<6x8x1xf32, #tpu.memory_space<vmem>>, vector<1x8x1xf32>
    %260 = vector.shape_cast %259 : vector<1x8x1xf32> to vector<8x1xf32>
    %261 = vector.broadcast %260 : vector<8x1xf32> to vector<8x256xf32>
    %262 = arith.mulf %258, %261 : vector<8x256xf32>
    %c5_167 = arith.constant 5 : index
    %c0_168 = arith.constant 0 : index
    %c0_169 = arith.constant 0 : index
    %263 = vector.load %arg12[%c5_167, %c0_168, %c0_169] : memref<6x8x1xf32, #tpu.memory_space<vmem>>, vector<1x8x1xf32>
    %264 = vector.shape_cast %263 : vector<1x8x1xf32> to vector<8x1xf32>
    %265 = vector.broadcast %264 : vector<8x1xf32> to vector<8x256xf32>
    %266 = arith.addf %262, %265 : vector<8x256xf32>
    %267 = tpu.concatenate %103, %144, %145, %266 in 0 : vector<8x256xf32>, vector<8x256xf32>, vector<8x256xf32>, vector<8x256xf32> -> vector<32x256xf32>
    %cst_170 = arith.constant 0.000000e+00 : f32
    %268 = vector.broadcast %cst_170 : f32 to vector<32x256xf32>
    %269 = arith.maximumf %267, %268 : vector<32x256xf32>
    %c0_171 = arith.constant 0 : index
    %c0_172 = arith.constant 0 : index
    %270 = vector.load %arg13[%c0_171, %c0_172] : memref<32x1xf32, #tpu.memory_space<vmem>>, vector<32x1xf32>
    %271 = vector.broadcast %270 : vector<32x1xf32> to vector<32x256xf32>
    %272 = arith.mulf %269, %271 : vector<32x256xf32>
    %c0_173 = arith.constant 0 : index
    %c0_174 = arith.constant 0 : index
    %273 = vector.load %arg14[%c0_173, %c0_174] : memref<32x1xf32, #tpu.memory_space<vmem>>, vector<32x1xf32>
    %274 = vector.broadcast %273 : vector<32x1xf32> to vector<32x256xf32>
    %275 = arith.addf %272, %274 : vector<32x256xf32>
    %c0_175 = arith.constant 0 : index
    %c0_176 = arith.constant 0 : index
    %c0_177 = arith.constant 0 : index
    %276 = vector.load %arg15[%c0_175, %c0_176, %c0_177] : memref<1x32x256xf32, #tpu.memory_space<vmem>>, vector<1x32x256xf32>
    %277 = vector.shape_cast %276 : vector<1x32x256xf32> to vector<32x256xf32>
    %278 = vector.shape_cast %275 : vector<32x256xf32> to vector<1x32x256xf32>
    tpu.vector_store %arg15[%c0_175, %c0_176, %c0_177], %278 {strides = array<i32>} : memref<1x32x256xf32, #tpu.memory_space<vmem>>, vector<1x32x256xf32>,
    return
  }
  func.func @transform_0(%arg0: i32) -> (i32, i32, i32) {
    %c0_i32 = arith.constant 0 : i32
    %c0_i32_0 = arith.constant 0 : i32
    %c0_i32_1 = arith.constant 0 : i32
    return %arg0, %c0_i32, %c0_i32_0 : i32, i32, i32
  }
  func.func @transform_1(%arg0: i32) -> (i32, i32, i32) {
    %c0_i32 = arith.constant 0 : i32
    %c0_i32_0 = arith.constant 0 : i32
    %c0_i32_1 = arith.constant 0 : i32
    %c0_i32_2 = arith.constant 0 : i32
    return %c0_i32, %c0_i32_0, %c0_i32_1 : i32, i32, i32
  }
  func.func @transform_2(%arg0: i32) -> (i32, i32) {
    %c0_i32 = arith.constant 0 : i32
    %c0_i32_0 = arith.constant 0 : i32
    %c0_i32_1 = arith.constant 0 : i32
    return %c0_i32, %c0_i32_0 : i32, i32
  }
  func.func @transform_3(%arg0: i32) -> (i32, i32) {
    %c0_i32 = arith.constant 0 : i32
    %c0_i32_0 = arith.constant 0 : i32
    %c0_i32_1 = arith.constant 0 : i32
    return %c0_i32, %c0_i32_0 : i32, i32
  }
  func.func @transform_4(%arg0: i32) -> (i32, i32) {
    %c0_i32 = arith.constant 0 : i32
    %c0_i32_0 = arith.constant 0 : i32
    %c0_i32_1 = arith.constant 0 : i32
    return %c0_i32, %c0_i32_0 : i32, i32
  }
  func.func @transform_5(%arg0: i32) -> (i32, i32) {
    %c0_i32 = arith.constant 0 : i32
    %c0_i32_0 = arith.constant 0 : i32
    %c0_i32_1 = arith.constant 0 : i32
    return %c0_i32, %c0_i32_0 : i32, i32
  }
  func.func @transform_6(%arg0: i32) -> (i32, i32, i32) {
    %c0_i32 = arith.constant 0 : i32
    %c0_i32_0 = arith.constant 0 : i32
    %c0_i32_1 = arith.constant 0 : i32
    %c0_i32_2 = arith.constant 0 : i32
    return %c0_i32, %c0_i32_0, %c0_i32_1 : i32, i32, i32
  }
  func.func @transform_7(%arg0: i32) -> (i32, i32, i32) {
    %c0_i32 = arith.constant 0 : i32
    %c0_i32_0 = arith.constant 0 : i32
    %c0_i32_1 = arith.constant 0 : i32
    %c0_i32_2 = arith.constant 0 : i32
    return %c0_i32, %c0_i32_0, %c0_i32_1 : i32, i32, i32
  }
  func.func @transform_8(%arg0: i32) -> (i32, i32, i32) {
    %c0_i32 = arith.constant 0 : i32
    %c0_i32_0 = arith.constant 0 : i32
    %c0_i32_1 = arith.constant 0 : i32
    %c0_i32_2 = arith.constant 0 : i32
    return %c0_i32, %c0_i32_0, %c0_i32_1 : i32, i32, i32
  }
  func.func @transform_9(%arg0: i32) -> (i32, i32, i32) {
    %c0_i32 = arith.constant 0 : i32
    %c0_i32_0 = arith.constant 0 : i32
    %c0_i32_1 = arith.constant 0 : i32
    %c0_i32_2 = arith.constant 0 : i32
    return %c0_i32, %c0_i32_0, %c0_i32_1 : i32, i32, i32
  }
  func.func @transform_10(%arg0: i32) -> (i32, i32, i32) {
    %c0_i32 = arith.constant 0 : i32
    %c0_i32_0 = arith.constant 0 : i32
    %c0_i32_1 = arith.constant 0 : i32
    %c0_i32_2 = arith.constant 0 : i32
    return %c0_i32, %c0_i32_0, %c0_i32_1 : i32, i32, i32
  }
  func.func @transform_11(%arg0: i32) -> (i32, i32, i32) {
    %c0_i32 = arith.constant 0 : i32
    %c0_i32_0 = arith.constant 0 : i32
    %c0_i32_1 = arith.constant 0 : i32
    %c0_i32_2 = arith.constant 0 : i32
    return %c0_i32, %c0_i32_0, %c0_i32_1 : i32, i32, i32
  }
  func.func @transform_12(%arg0: i32) -> (i32, i32) {
    %c0_i32 = arith.constant 0 : i32
    %c0_i32_0 = arith.constant 0 : i32
    %c0_i32_1 = arith.constant 0 : i32
    return %c0_i32, %c0_i32_0 : i32, i32
  }
  func.func @transform_13(%arg0: i32) -> (i32, i32) {
    %c0_i32 = arith.constant 0 : i32
    %c0_i32_0 = arith.constant 0 : i32
    %c0_i32_1 = arith.constant 0 : i32
    return %c0_i32, %c0_i32_0 : i32, i32
  }
  func.func @transform_14(%arg0: i32) -> (i32, i32, i32) {
    %c0_i32 = arith.constant 0 : i32
    %c0_i32_0 = arith.constant 0 : i32
    %c0_i32_1 = arith.constant 0 : i32
    return %arg0, %c0_i32, %c0_i32_0 : i32, i32, i32
  }
}

</mosaic_0001>

<bundles_post_ra>
// kernel: incept_module_b_factor.1
= control target key start
LH: loop header
LB: loop body
LE: loop exit
PB: predicated region body
PF: predicated region fallthrough
CT: control target
= control target key end

     0   :  { %s2403_s29 = smov 0   ;;  %s2946_s0 = inlined_call_operand.vmem [shape: f32[2,4,256], index: 0, kind: input, shape index: {}]   ;;  %s2947_s1 = inlined_call_operand.vmem [shape: f32[4,1,256], index: 1, kind: input, shape index: {}]   ;;  %s2948_s2 = inlined_call_operand.vmem [shape: f32[32,4], index: 2, kind: input, shape index: {}]   ;;  %s2949_s3 = inlined_call_operand.vmem [shape: f32[32,1], index: 3, kind: input, shape index: {}]   ;;  %s2950_s4 = inlined_call_operand.vmem [shape: f32[32,1], index: 4, kind: input, shape index: {}]   ;;  %s2951_s5 = inlined_call_operand.vmem [shape: f32[32,1], index: 5, kind: input, shape index: {}]   ;;  %s2952_s6 = inlined_call_operand.vmem [shape: f32[6,8,24], index: 6, kind: input, shape index: {}]   ;;  %s2953_s7 = inlined_call_operand.vmem [shape: f32[6,8,1], index: 7, kind: input, shape index: {}]   ;;  %s2954_s8 = inlined_call_operand.vmem [shape: f32[6,8,24], index: 8, kind: input, shape index: {}]   ;;  %s2955_s9 = inlined_call_operand.vmem [shape: f32[6,8,1], index: 9, kind: input, shape index: {}]   ;;  %s2956_s10 = inlined_call_operand.vmem [shape: f32[6,8,1], index: 10, kind: input, shape index: {}]   ;;  %s2957_s11 = inlined_call_operand.vmem [shape: f32[6,8,1], index: 11, kind: input, shape index: {}]   ;;  %s2958_s12 = inlined_call_operand.vmem [shape: f32[32,1], index: 12, kind: input, shape index: {}]   ;;  %s2959_s13 = inlined_call_operand.vmem [shape: f32[32,1], index: 13, kind: input, shape index: {}]   ;;  %s2960_s14 = inlined_call_operand.vmem [shape: f32[2,32,256], index: 14, kind: output, shape index: {}]  }
   0x1 LB: > { %s2185_s30 = sadd.s32 4294967295, %s2320_s29   ;;  %p2189_p0 = scmp.ge.s32.totalorder %s2320_s29, 1  ;;  %s2320_s29 = sphi %s2403_s29, %s24_s29  }
   0x2   : > { %p412_p1 = scmp.lt.s32.totalorder %s2320_s29, 3 }
   0x4   : > { %p413_p2 = pnand %p2189_p0, %p412_p1 }
   0x5   : > { %p458_p3 = scmp.lt.s32.totalorder (!%p413_p2), %s2185_s30, 1  ;;  %v2322_v0 = vmov (!%p413_p2), 0.0   ;;  %v2323_v1 = vmov (!%p413_p2), 0   ;;  %v473_v2 = vld [vmem:[%s2949_s3] sm:$0xff] (!%p413_p2)  ;;  %vm512_vm0 = vcmask (!%p413_p2), 1043456   ;;  %vm499_vm1 = vcmask (!%p413_p2), 31744  }
   0x6   : > { %416 = sbr.rel (%p413_p2) target bundleno = 3025 (0xbd1), region = 76  ;;  %581 = vmatprep.mubr.f32.mxu0 (!%p413_p2), %v2322_v0  ;;  %2311 = vset.pattern.permute.xlu0 (!%p413_p2), %v2323_v1  ;;  %v646_v3 = vld [vmem:[%s2951_s5] sm:$0xff] (!%p413_p2)  ;;  %s2324_s27 = smov (!%p413_p2), 16   ;;  %v470_v22 = vld [vmem:[%s2948_s2 + $0x8] sm:$0xff] (!%p413_p2)  ;;  %v471_v23 = vld [vmem:[%s2948_s2 + $0x10] sm:$0xff] (!%p413_p2)  ;;  %v690_v25 = vlaneseq (!%p413_p2)  ;;  %vm734_vm4 = vcmask (!%p413_p2), 195584  }
   0x7   : > { %479 = vperm.xlu0 (!%p413_p2), %2311, %v473_v2   ;;  %2312 = vset.pattern.permute.xlu1 (!%p413_p2), %v2323_v1  ;;  %v614_v4 = vld [vmem:[%s2950_s4] sm:$0xff] (!%p413_p2)  ;;  %s2325_s28 = smov (!%p413_p2), 112   ;;  %v472_v24 = vld [vmem:[%s2948_s2 + $0x18] sm:$0xff] (!%p413_p2)  ;;  %s2326_s17 = smov (!%p413_p2), 1   ;;  %v474_v61 = vld [vmem:[%s2949_s3 + $0x8] sm:$0xff] (!%p413_p2) }
   0x8   : > { %652 = vperm.xlu1 (!%p413_p2), %2312, %v646_v3   ;;  %802 = vmatprep.mubr.f32.mxu1 (!%p413_p2), %v2322_v0  ;;  %v469_v7 = vld [vmem:[%s2948_s2] sm:$0xff] (!%p413_p2)  ;;  %v697_v26 = vshrl.u32 (!%p413_p2), %v690_v25, 7  ;;  %v2455_v27 = vand.u32 (!%p413_p2), 127, %v690_v25  ;;  %s2327_s18 = smov (!%p413_p2), 127   ;;  %v615_v1 = vld [vmem:[%s2950_s4 + $0x8] sm:$0xff] (!%p413_p2)  ;;  %v476_v3 = vld [vmem:[%s2949_s3 + $0x18] sm:$0xff] (!%p413_p2) }
   0x9   : > { %v728_v21 = vld [vmem:[%s2953_s7] sm:$0xff] (!%p413_p2) }
   0xa   : > { %v2457_v28 = vsub.s32 (!%p413_p2), 0, %v697_v26  ;;  %v2459_v29 = vsub.s32 (!%p413_p2), 1, %v697_v26  ;;  %v678_v30 = vld [vmem:[%s2947_s1] sm:$0x3] (!%p413_p2)  ;;  %vm692_vm2 = vcmp.lt.s32.totalorder (!%p413_p2), %v2455_v27, 16  ;;  %vm712_vm3 = vcmp.lt.s32.totalorder (!%p413_p2), %v2455_v27, 112 }
   0xb   : > { %620 = vperm.xlu0 (!%p413_p2), %2311, %v614_v4   ;;  %v2200_v34 = vld [vmem:[%s2947_s1 + $0x2] sm:$0x3] (!%p413_p2)  ;;  %vm816_vm5 = vcmp.lt.s32.totalorder (!%p413_p2), %v2455_v27, 1  ;;  %vm836_vm6 = vcmp.lt.s32.totalorder (!%p413_p2), %v2455_v27, 127 }
   0xc   : > { %v2466_v31 = vrot.slane (!%p413_p2), %v678_v30, %v2457_v28  ;;  %v2469_v32 = vrot.slane (!%p413_p2), %v678_v30, %v2459_v29  ;;  %v2481_v39 = vrot.slane (!%p413_p2), %v2200_v34, %v2459_v29  ;;  %v2485_v45 = vrot.slane (!%p413_p2), %v2200_v34, %v2457_v28  ;;  %v685_v50 = vld [vmem:[%s2952_s6] sm:$0xff] (!%p413_p2) }
   0xd   : > { %s2962_s30 = smov (!%p458_p3, %s2185_s30), 1  ;;  %v852_v58 = vld [vmem:[%s2955_s9] sm:$0xff] }
   0xe   : > { %s2247_s21 = sshll.u32 %s2962_s30, 3  ;;  %v934_v59 = vld [vmem:[%s2956_s10] sm:$0xff] }
   0xf   : > { %s462_s24 = scalar_lea.vmem %s2946_s0, %s2247_s21  ;;  %v942_v63 = vld [vmem:[%s2957_s11] sm:$0xff]  ;;  %s2248_s21 = sshll.u32 %s2962_s30, 6 }
  0x10   : > { %v468_v5 = vld [vmem:[%s462_s24] sm:$0xff]  ;;  %s2929_s24 = scalar_lea.vmem %s2960_s14, %s2248_s21 }
  0x11   : > { %v498_v6 = vcombine.high %v468_v5, %v468_v5  ;;  %v811_v34 = vld [vmem:[%s2954_s8] sm:$0xff] }
  0x13   : > { %2194 = vmatprep.subr.msk.mxu0 %vm512_vm0, %v498_v6 }
  0x14   : > { %2195 = vmatpush1.msk.msra.mxu0 %vm512_vm0, %v468_v5 }
  0x15   : > { %2196 = vmatmul.mubr.msk.f32.vlgmr.msra.gmra.mrb[0].mxu0 %vm499_vm1, %v469_v7  ;;  %v647_v7 = vld [vmem:[%s2951_s5 + $0x8] sm:$0xff] }
  0x16   : > { %587 = vmatprep.mubr.f32.mxu0 %v2322_v0 }
  0x19   : > { %2197 = vmatmul.mubr.msk.f32.gmra.mrb[2].mxu0 %vm499_vm1, %v470_v22 }
  0x1a   : > { %593 = vmatprep.mubr.f32.mxu0 %v2322_v0 }
  0x1d   : > { %2198 = vmatmul.mubr.msk.f32.gmra.mrb[4].mxu0 %vm499_vm1, %v471_v23 }
  0x1e   : > { %599 = vmatprep.mubr.f32.mxu0 %v2322_v0 }
  0x21   : > { %2199 = vmatmul.mubr.msk.f32.gmra.mrb[6].mxu0 %vm499_vm1, %v472_v24 }
  0x22   : > { %1042 = vmatprep.mubr.f32.mxu0 %v2322_v0 }
  0x86   : > { %v480_v8 = vpop.permute.xlu0 %479 }
  0x87   : > { %v653_v16 = vpop.permute.xlu1 %652 }
  0x8a   : > { %v621_v14 = vpop.permute.xlu0 %620 }
  0xe8   : > { %v583_v9 = vpop.f32.mrb[0].mxu0 }
  0xe9   : > { %v584_v10 = vadd.f32 %v583_v9, %v480_v8  ;;  %v585_v11 = vpop.f32.mrb[1].mxu0  ;;  %v649_v9 = vld [vmem:[%s2951_s5 + $0x18] sm:$0xff] }
  0xea   : > { %v586_v12 = vadd.f32 %v585_v11, %v480_v8  ;;  %v617_v8 = vld [vmem:[%s2950_s4 + $0x18] sm:$0xff] }
  0xeb   : > { %v606_v13 = vmax.f32 %v584_v10, 0.0  ;;  %v2201_v10 = vld [vmem:[%s2947_s1 + $0x4] sm:$0x3] }
  0xec   : > { %v607_v15 = vmax.f32 %v586_v12, 0.0  ;;  %v589_v60 = vpop.f32.mrb[2].mxu0  ;;  %v2542_v11 = vrot.slane %v2201_v10, %v2457_v28  ;;  %v2545_v12 = vrot.slane %v2201_v10, %v2459_v29  ;;  %v2206_v10 = vld [vmem:[%s2953_s7 + $0x8] sm:$0xff] }
  0xed   : > { %v638_v17 = vmul.f32 %v621_v14, %v606_v13  ;;  %v591_v62 = vpop.f32.mrb[3].mxu0 }
  0xee   : > { %v639_v18 = vmul.f32 %v621_v14, %v607_v15  ;;  %v2202_v14 = vld [vmem:[%s2947_s1 + $0x6] sm:$0x3] }
  0xef   : > { %v670_v19 = vadd.f32 %v653_v16, %v638_v17  ;;  %v2561_v25 = vrot.slane %v2202_v14, %v2457_v28 }
  0xf0   : > { %v671_v20 = vadd.f32 %v653_v16, %v639_v18  ;;  %v2517_v2 = vpop.f32.mrb[4].mxu0 }
  0xf1   : > { %686 = vrot.lane.b32.xlu1 %v670_v19, %s2324_s27  ;;  %v2522_v4 = vpop.f32.mrb[5].mxu0 }
  0xf2   : > { %688 = vrot.lane.b32.xlu0 %v671_v20, %s2324_s27 }
  0xf4   : > { %v2524_v5 = vpop.f32.mrb[6].mxu0 }
  0xf5   : > { %708 = vrot.lane.b32.xlu1 %v670_v19, %s2325_s28  ;;  %v2526_v6 = vpop.f32.mrb[7].mxu0 }
  0xf6   : > { %710 = vrot.lane.b32.xlu0 %v671_v20, %s2325_s28 }
  0xf9   : > { %731 = vperm.xlu1 %2312, %v728_v21  }
 0x163   : > { %v687_v33 = vpop.permute.xlu1 %686 }
 0x164   : > { %v689_v35 = vpop.permute.xlu0 %688 }
 0x165   : > { %v693_v36 = vsel %vm692_vm2, %v687_v33, %v689_v35  ;;  %v694_v37 = vsel %vm692_vm2, %v689_v35, %v687_v33 }
 0x166   : > { %v706_v38 = vmul.f32 %v2466_v31, %v694_v37  ;;  %v707_v40 = vmul.f32 %v2469_v32, %v693_v36 }
 0x167   : > { %v709_v41 = vpop.permute.xlu1 %708 }
 0x168   : > { %v711_v42 = vpop.permute.xlu0 %710  ;;  %v2249_v43 = vpack.c.bf16 %v671_v20, %v707_v40  ;;  %v2251_v44 = vpack.c.bf16 %v670_v19, %v706_v38  ;;  %v2558_v20 = vrot.slane %v2202_v14, %v2459_v29  ;;  %v2222_v14 = vld [vmem:[%s2953_s7 + $0x18] sm:$0xff] }
 0x169   : > { %v714_v46 = vsel %vm712_vm3, %v711_v42, %v709_v41  ;;  %v713_v47 = vsel %vm712_vm3, %v709_v41, %v711_v42 }
 0x16a   : > { %v727_v48 = vmul.f32 %v2481_v39, %v714_v46  ;;  %2250 = vmatprep.subr.bf16.mxu1 %v2249_v43  ;;  %v726_v49 = vmul.f32 %v2485_v45, %v713_v47 }
 0x16b   : > { %2252 = vmatpush1.bf16.msra.mxu1 %v2251_v44 }
 0x16c   : > { %742 = vmatprep.subr.mxu1 %v727_v48 }
 0x16f   : > { %743 = vmatpush1.msra.mxu1 %v726_v49 }
 0x170   : > { %2203 = vmatmul.mubr.msk.f32.vlgmr.msra.gmra.mrb[0].mxu1 %vm734_vm4, %v685_v50 }
 0x171   : > { %925 = vmatprep.mubr.f32.mxu1 %v2322_v0 }
 0x178   : > { %v732_v51 = vpop.permute.xlu1 %731 }
 0x243   : > { %v804_v52 = vpop.f32.mrb[0].mxu1 }
 0x244   : > { %v805_v53 = vadd.f32 %v804_v52, %v732_v51  ;;  %v806_v54 = vpop.f32.mrb[1].mxu1 }
 0x245   : > { %v807_v55 = vadd.f32 %v806_v54, %v732_v51 }
 0x246   : > { %v809_v56 = vmax.f32 %v805_v53, 0.0 }
 0x247   : > { %v810_v57 = vmax.f32 %v807_v55, 0.0 }
 0x248   : > { %812 = vrot.lane.b32.xlu0 %v809_v56, %s2326_s17 }
 0x249   : > { %814 = vrot.lane.b32.xlu1 %v810_v57, %s2326_s17 }
 0x24c   : > { %832 = vrot.lane.b32.xlu0 %v809_v56, %s2327_s18 }
 0x24d   : > { %834 = vrot.lane.b32.xlu1 %v810_v57, %s2327_s18 }
 0x250   : > { %855 = vperm.xlu0 %2311, %v852_v58  }
 0x251   : > { %937 = vperm.xlu1 %2312, %v934_v59  }
 0x254   : > { %484 = vperm.xlu0 %2311, %v474_v61  }
 0x255   : > { %945 = vperm.xlu1 %2312, %v942_v63  }
 0x258   : > { %625 = vperm.xlu0 %2311, %v615_v1  }
 0x259   : > { %494 = vperm.xlu1 %2312, %v476_v3  }
 0x25c   : > { %657 = vperm.xlu0 %2311, %v647_v7  }
 0x25d   : > { %635 = vperm.xlu1 %2312, %v617_v8  }
 0x260   : > { %667 = vperm.xlu0 %2311, %v649_v9  }
 0x2ba   : > { %v813_v13 = vpop.permute.xlu0 %812 }
 0x2bb   : > { %v815_v15 = vpop.permute.xlu1 %814 }
 0x2bc   : > { %v817_v16 = vsel %vm816_vm5, %v813_v13, %v815_v15  ;;  %v818_v17 = vsel %vm816_vm5, %v815_v15, %v813_v13  ;;  %v2214_v13 = vld [vmem:[%s2953_s7 + $0x10] sm:$0xff] }
 0x2bd   : > { %v830_v18 = vmul.f32 %v2542_v11, %v818_v17  ;;  %v831_v19 = vmul.f32 %v2545_v12, %v817_v16 }
 0x2be   : > { %v833_v21 = vpop.permute.xlu0 %832 }
 0x2bf   : > { %v2255_v22 = vpack.c.bf16 %v809_v56, %v830_v18  ;;  %v835_v23 = vpop.permute.xlu1 %834  ;;  %v2253_v24 = vpack.c.bf16 %v810_v57, %v831_v19 }
 0x2c0   : > { %v838_v26 = vsel %vm836_vm6, %v835_v23, %v833_v21  ;;  %v837_v30 = vsel %vm836_vm6, %v833_v21, %v835_v23 }
 0x2c1   : > { %v851_v33 = vmul.f32 %v2558_v20, %v838_v26  ;;  %2254 = vmatprep.subr.bf16.mxu1 %v2253_v24  ;;  %v850_v29 = vmul.f32 %v2561_v25, %v837_v30 }
 0x2c2   : > { %2256 = vmatpush1.bf16.msra.mxu1 %v2255_v22 }
 0x2c3   : > { %865 = vmatprep.subr.mxu1 %v851_v33 }
 0x2c6   : > { %866 = vmatpush1.msra.mxu1 %v850_v29 }
 0x2c7   : > { %2204 = vmatmul.mubr.msk.f32.vlgmr.msra.gmra.mrb[2].mxu1 %vm734_vm4, %v811_v34 }
 0x2c8   : > { %1143 = vmatprep.mubr.f32.mxu1 %v2322_v0 }
 0x2cf   : > { %v856_v28 = vpop.permute.xlu0 %855 }
 0x2d0   : > { %v938_v48 = vpop.permute.xlu1 %937 }
 0x2d3   : > { %v485_v35 = vpop.permute.xlu0 %484 }
 0x2d4   : > { %v590_v36 = vadd.f32 %v589_v60, %v485_v35  ;;  %v592_v37 = vadd.f32 %v591_v62, %v485_v35  ;;  %v946_v49 = vpop.permute.xlu1 %945 }
 0x2d6   : > { %v608_v38 = vmax.f32 %v590_v36, 0.0  ;;  %v609_v40 = vmax.f32 %v592_v37, 0.0 }
 0x2d7   : > { %v626_v41 = vpop.permute.xlu0 %625 }
 0x2d8   : > { %v640_v42 = vmul.f32 %v626_v41, %v608_v38  ;;  %v641_v43 = vmul.f32 %v626_v41, %v609_v40  ;;  %v495_v55 = vpop.permute.xlu1 %494 }
 0x2d9   : > { %v602_v59 = vadd.f32 %v2524_v5, %v495_v55  ;;  %v604_v61 = vadd.f32 %v2526_v6, %v495_v55 }
 0x2db   : > { %v658_v44 = vpop.permute.xlu0 %657  ;;  %v612_v63 = vmax.f32 %v602_v59, 0.0  ;;  %v613_v1 = vmax.f32 %v604_v61, 0.0 }
 0x2dc   : > { %v2574_v46 = vadd.f32 %v658_v44, %v640_v42  ;;  %v2576_v47 = vadd.f32 %v658_v44, %v641_v43  ;;  %v636_v3 = vpop.permute.xlu1 %635  ;;  %v2205_v44 = vld [vmem:[%s2952_s6 + $0x8] sm:$0xff] }
 0x2dd   : > { %v644_v7 = vmul.f32 %v636_v3, %v612_v63  ;;  %v645_v8 = vmul.f32 %v636_v3, %v613_v1 }
 0x2de   : > { %1174 = vrot.lane.b32.xlu0 %v2576_v47, %s2324_s27  ;;  %1172 = vrot.lane.b32.xlu1 %v2574_v46, %s2324_s27 }
 0x2df   : > { %v668_v9 = vpop.permute.xlu0 %667 }
 0x2e0   : > { %v2592_v5 = vadd.f32 %v668_v9, %v644_v7  ;;  %v2594_v6 = vadd.f32 %v668_v9, %v645_v8  ;;  %v2221_v7 = vld [vmem:[%s2952_s6 + $0x18] sm:$0xff] }
 0x350   : > { %v1173_v15 = vpop.permute.xlu1 %1172  ;;  %v1175_v16 = vpop.permute.xlu0 %1174 }
 0x351   : > { %v1176_v24 = vsel %vm692_vm2, %v1173_v15, %v1175_v16  ;;  %v1177_v30 = vsel %vm692_vm2, %v1175_v16, %v1173_v15 }
 0x352   : > { %v1179_v35 = vmul.f32 %v1176_v24, %v2469_v32  ;;  %v1178_v38 = vmul.f32 %v1177_v30, %v2466_v31 }
 0x39a   : > { %v927_v50 = vpop.f32.mrb[2].mxu1 }
 0x39b   : > { %v928_v51 = vadd.f32 %v927_v50, %v856_v28  ;;  %v929_v52 = vpop.f32.mrb[3].mxu1 }
 0x39c   : > { %v930_v53 = vadd.f32 %v929_v52, %v856_v28 }
 0x39d   : > { %v932_v54 = vmax.f32 %v928_v51, 0.0 }
 0x39e   : > { %v933_v56 = vmax.f32 %v930_v53, 0.0 }
 0x39f   : > { %v940_v57 = vmul.f32 %v938_v48, %v932_v54 }
 0x3a0   : > { %v941_v58 = vmul.f32 %v938_v48, %v933_v56  ;;  %v2265_v48 = vpack.c.bf16 %v2576_v47, %v1179_v35  ;;  %v2227_v35 = vld [vmem:[%s2956_s10 + $0x18] sm:$0xff] }
 0x3a1   : > { %v948_v60 = vadd.f32 %v946_v49, %v940_v57 }
 0x3a2   : > { %v949_v62 = vadd.f32 %v946_v49, %v941_v58  ;;  %v2267_v49 = vpack.c.bf16 %v2574_v46, %v1178_v38  ;;  %v2213_v58 = vld [vmem:[%s2952_s6 + $0x10] sm:$0xff] }
 0x3a3   : > { %952 = vrot.lane.b32.xlu1 %v948_v60, %s2324_s27 }
 0x3a4   : > { %954 = vrot.lane.b32.xlu0 %v949_v62, %s2324_s27 }
 0x3a7   : > { %960 = vrot.lane.b32.xlu1 %v948_v60, %s2325_s28 }
 0x3a8   : > { %962 = vrot.lane.b32.xlu0 %v949_v62, %s2325_s28 }
 0x3ab   : > { %1180 = vrot.lane.b32.xlu1 %v2574_v46, %s2325_s28 }
 0x3ac   : > { %1182 = vrot.lane.b32.xlu0 %v2576_v47, %s2325_s28 }
 0x3af   : > { %1392 = vrot.lane.b32.xlu1 %v2592_v5, %s2324_s27 }
 0x3b0   : > { %1394 = vrot.lane.b32.xlu0 %v2594_v6, %s2324_s27 }
 0x3b3   : > { %1400 = vrot.lane.b32.xlu1 %v2592_v5, %s2325_s28 }
 0x3b4   : > { %1402 = vrot.lane.b32.xlu0 %v2594_v6, %s2325_s28 }
 0x3b7   : > { %972 = vperm.xlu1 %2312, %v2206_v10  }
 0x3b8   : > { %1192 = vperm.xlu0 %2311, %v2214_v13  }
 0x3bb   : > { %1412 = vperm.xlu1 %2312, %v2222_v14  }
 0x415   : > { %v953_v17 = vpop.permute.xlu1 %952 }
 0x416   : > { %v955_v18 = vpop.permute.xlu0 %954 }
 0x417   : > { %v956_v19 = vsel %vm692_vm2, %v953_v17, %v955_v18  ;;  %v957_v21 = vsel %vm692_vm2, %v955_v18, %v953_v17 }
 0x418   : > { %v958_v22 = vmul.f32 %v957_v21, %v2466_v31  ;;  %v959_v23 = vmul.f32 %v956_v19, %v2469_v32 }
 0x419   : > { %v961_v26 = vpop.permute.xlu1 %960 }
 0x41a   : > { %v2259_v33 = vpack.c.bf16 %v948_v60, %v958_v22  ;;  %v963_v29 = vpop.permute.xlu0 %962  ;;  %v2257_v34 = vpack.c.bf16 %v949_v62, %v959_v23 }
 0x41b   : > { %v965_v28 = vsel %vm712_vm3, %v963_v29, %v961_v26  ;;  %v964_v36 = vsel %vm712_vm3, %v961_v26, %v963_v29 }
 0x41c   : > { %v967_v37 = vmul.f32 %v965_v28, %v2481_v39  ;;  %2258 = vmatprep.subr.bf16.mxu0 %v2257_v34  ;;  %v966_v42 = vmul.f32 %v964_v36, %v2485_v45  ;;  %v2225_v28 = vld [vmem:[%s2955_s9 + $0x18] sm:$0xff] }
 0x41d   : > { %v1181_v40 = vpop.permute.xlu1 %1180  ;;  %2260 = vmatpush1.bf16.msra.mxu0 %v2259_v33  ;;  %v2228_v36 = vld [vmem:[%s2957_s11 + $0x18] sm:$0xff] }
 0x41e   : > { %982 = vmatprep.subr.mxu0 %v967_v37  ;;  %v1183_v41 = vpop.permute.xlu0 %1182 }
 0x41f   : > { %v1185_v43 = vsel %vm712_vm3, %v1183_v41, %v1181_v40  ;;  %v1184_v51 = vsel %vm712_vm3, %v1181_v40, %v1183_v41 }
 0x420   : > { %v1187_v52 = vmul.f32 %v1185_v43, %v2481_v39  ;;  %v1186_v56 = vmul.f32 %v1184_v51, %v2485_v45 }
 0x421   : > { %v1393_v50 = vpop.permute.xlu1 %1392  ;;  %983 = vmatpush1.msra.mxu0 %v966_v42 }
 0x422   : > { %2207 = vmatmul.mubr.msk.f32.vlgmr.msra.gmra.mrb[8].mxu0 %vm734_vm4, %v2205_v44  ;;  %2266 = vmatprep.subr.bf16.mxu0 %v2265_v48  ;;  %v1395_v53 = vpop.permute.xlu0 %1394 }
 0x423   : > { %v1396_v54 = vsel %vm692_vm2, %v1393_v50, %v1395_v53  ;;  %v1397_v55 = vsel %vm692_vm2, %v1395_v53, %v1393_v50  ;;  %2268 = vmatpush1.bf16.msra.mxu0 %v2267_v49  ;;  %1262 = vmatprep.mubr.f32.mxu0 %v2322_v0 }
 0x424   : > { %v1398_v46 = vmul.f32 %v1397_v55, %v2466_v31  ;;  %v1399_v47 = vmul.f32 %v1396_v54, %v2469_v32  ;;  %1202 = vmatprep.subr.mxu0 %v1187_v52 }
 0x425   : > { %v1401_v57 = vpop.permute.xlu1 %1400 }
 0x426   : > { %v2275_v59 = vpack.c.bf16 %v2592_v5, %v1398_v46  ;;  %v1403_v60 = vpop.permute.xlu0 %1402  ;;  %v2273_v61 = vpack.c.bf16 %v2594_v6, %v1399_v47 }
 0x427   : > { %v1405_v62 = vsel %vm712_vm3, %v1403_v60, %v1401_v57  ;;  %1203 = vmatpush1.msra.mxu0 %v1186_v56  ;;  %v1404_v63 = vsel %vm712_vm3, %v1401_v57, %v1403_v60  ;;  %v2208_v57 = vld [vmem:[%s2954_s8 + $0x8] sm:$0xff] }
 0x428   : > { %v1407_v1 = vmul.f32 %v1405_v62, %v2481_v39  ;;  %2215 = vmatmul.mubr.msk.f32.vlgmr.msra.gmra.mrb[10].mxu0 %vm734_vm4, %v2213_v58  ;;  %2274 = vmatprep.subr.bf16.mxu0 %v2273_v61  ;;  %v1406_v3 = vmul.f32 %v1404_v63, %v2485_v45 }
 0x429   : > { %2276 = vmatpush1.bf16.msra.mxu0 %v2275_v59  ;;  %1482 = vmatprep.mubr.f32.mxu0 %v2322_v0 }
 0x42a   : > { %1422 = vmatprep.subr.mxu0 %v1407_v1 }
 0x42d   : > { %1423 = vmatpush1.msra.mxu0 %v1406_v3 }
 0x42e   : > { %2223 = vmatmul.mubr.msk.f32.vlgmr.msra.gmra.mrb[12].mxu0 %vm734_vm4, %v2221_v7 }
 0x42f   : > { %1702 = vmatprep.mubr.f32.mxu0 %v2322_v0 }
 0x436   : > { %v973_v8 = vpop.permute.xlu1 %972 }
 0x437   : > { %v1193_v15 = vpop.permute.xlu0 %1192 }
 0x43a   : > { %v1413_v26 = vpop.permute.xlu1 %1412 }
 0x4f5   : > { %v1044_v9 = vpop.f32.mrb[8].mxu0 }
 0x4f6   : > { %v1045_v5 = vadd.f32 %v1044_v9, %v973_v8  ;;  %v1046_v6 = vpop.f32.mrb[9].mxu0 }
 0x4f7   : > { %v1047_v10 = vadd.f32 %v1046_v6, %v973_v8 }
 0x4f8   : > { %v1049_v13 = vmax.f32 %v1045_v5, 0.0 }
 0x4f9   : > { %v1050_v14 = vmax.f32 %v1047_v10, 0.0 }
 0x4fa   : > { %1053 = vrot.lane.b32.xlu0 %v1049_v13, %s2326_s17 }
 0x4fb   : > { %1055 = vrot.lane.b32.xlu1 %v1050_v14, %s2326_s17  ;;  %v1264_v16 = vpop.f32.mrb[10].mxu0 }
 0x4fc   : > { %v1265_v17 = vadd.f32 %v1264_v16, %v1193_v15  ;;  %v1266_v18 = vpop.f32.mrb[11].mxu0 }
 0x4fd   : > { %v1267_v19 = vadd.f32 %v1266_v18, %v1193_v15 }
 0x4fe   : > { %1061 = vrot.lane.b32.xlu0 %v1049_v13, %s2327_s18  ;;  %v1269_v21 = vmax.f32 %v1265_v17, 0.0 }
 0x4ff   : > { %1063 = vrot.lane.b32.xlu1 %v1050_v14, %s2327_s18  ;;  %v1270_v22 = vmax.f32 %v1267_v19, 0.0 }
 0x501   : > { %v1484_v23 = vpop.f32.mrb[12].mxu0 }
 0x502   : > { %v1486_v24 = vpop.f32.mrb[13].mxu0  ;;  %1273 = vrot.lane.b32.xlu0 %v1269_v21, %s2326_s17  ;;  %v1485_v30 = vadd.f32 %v1484_v23, %v1413_v26 }
 0x503   : > { %1275 = vrot.lane.b32.xlu1 %v1270_v22, %s2326_s17  ;;  %v1487_v33 = vadd.f32 %v1486_v24, %v1413_v26  ;;  %v2224_v26 = vld [vmem:[%s2954_s8 + $0x18] sm:$0xff] }
 0x504   : > { %v2676_v29 = vmax.f32 %v1485_v30, 0.0 }
 0x505   : > { %v2678_v34 = vmax.f32 %v1487_v33, 0.0 }
 0x506   : > { %1281 = vrot.lane.b32.xlu0 %v1269_v21, %s2327_s18 }
 0x507   : > { %1283 = vrot.lane.b32.xlu1 %v1270_v22, %s2327_s18 }
 0x50a   : > { %1493 = vrot.lane.b32.xlu0 %v2676_v29, %s2326_s17 }
 0x50b   : > { %1495 = vrot.lane.b32.xlu1 %v2678_v34, %s2326_s17 }
 0x50e   : > { %1501 = vrot.lane.b32.xlu0 %v2676_v29, %s2327_s18 }
 0x50f   : > { %1503 = vrot.lane.b32.xlu1 %v2678_v34, %s2327_s18 }
 0x512   : > { %1513 = vperm.xlu0 %2311, %v2225_v28  }
 0x513   : > { %1596 = vperm.xlu1 %2312, %v2227_v35  }
 0x516   : > { %1605 = vperm.xlu0 %2311, %v2228_v36  }
 0x56c   : > { %v1054_v37 = vpop.permute.xlu0 %1053 }
 0x56d   : > { %v1056_v38 = vpop.permute.xlu1 %1055 }
 0x56e   : > { %v1057_v40 = vsel %vm816_vm5, %v1054_v37, %v1056_v38  ;;  %v1058_v41 = vsel %vm816_vm5, %v1056_v38, %v1054_v37 }
 0x56f   : > { %v1059_v42 = vmul.f32 %v1058_v41, %v2542_v11  ;;  %v1060_v43 = vmul.f32 %v1057_v40, %v2545_v12 }
 0x570   : > { %v1062_v44 = vpop.permute.xlu0 %1061 }
 0x571   : > { %v2263_v48 = vpack.c.bf16 %v1049_v13, %v1059_v42  ;;  %v1064_v49 = vpop.permute.xlu1 %1063  ;;  %v2261_v50 = vpack.c.bf16 %v1050_v14, %v1060_v43  ;;  %v2216_v13 = vld [vmem:[%s2954_s8 + $0x10] sm:$0xff] }
 0x572   : > { %v1066_v51 = vsel %vm836_vm6, %v1064_v49, %v1062_v44  ;;  %v1065_v52 = vsel %vm836_vm6, %v1062_v44, %v1064_v49 }
 0x573   : > { %v1068_v53 = vmul.f32 %v1066_v51, %v2558_v20  ;;  %2262 = vmatprep.subr.bf16.mxu1 %v2261_v50  ;;  %v1067_v46 = vmul.f32 %v1065_v52, %v2561_v25  ;;  %v2230_v51 = vld [vmem:[%s2953_s7 + $0x20] sm:$0xff] }
 0x574   : > { %2264 = vmatpush1.bf16.msra.mxu1 %v2263_v48  ;;  %v1274_v54 = vpop.permute.xlu0 %1273 }
 0x575   : > { %v1276_v55 = vpop.permute.xlu1 %1275  ;;  %1083 = vmatprep.subr.mxu1 %v1068_v53 }
 0x576   : > { %v1277_v47 = vsel %vm816_vm5, %v1274_v54, %v1276_v55  ;;  %v1278_v56 = vsel %vm816_vm5, %v1276_v55, %v1274_v54 }
 0x577   : > { %v1279_v58 = vmul.f32 %v1278_v56, %v2542_v11  ;;  %v1280_v59 = vmul.f32 %v1277_v47, %v2545_v12 }
 0x578   : > { %1084 = vmatpush1.msra.mxu1 %v1067_v46  ;;  %v1282_v60 = vpop.permute.xlu0 %1281 }
 0x579   : > { %v2271_v61 = vpack.c.bf16 %v1269_v21, %v1279_v58  ;;  %v1284_v62 = vpop.permute.xlu1 %1283  ;;  %v2269_v63 = vpack.c.bf16 %v1270_v22, %v1280_v59  ;;  %2210 = vmatmul.mubr.msk.f32.vlgmr.msra.gmra.mrb[4].mxu1 %vm734_vm4, %v2208_v57 }
 0x57a   : > { %v1286_v1 = vsel %vm836_vm6, %v1284_v62, %v1282_v60  ;;  %1363 = vmatprep.mubr.f32.mxu1 %v2322_v0  ;;  %v1285_v3 = vsel %vm836_vm6, %v1282_v60, %v1284_v62 }
 0x57b   : > { %v1288_v7 = vmul.f32 %v1286_v1, %v2558_v20  ;;  %2270 = vmatprep.subr.bf16.mxu1 %v2269_v63  ;;  %v1287_v5 = vmul.f32 %v1285_v3, %v2561_v25  ;;  %v2229_v1 = vld [vmem:[%s2952_s6 + $0x20] sm:$0xff] }
 0x57c   : > { %2272 = vmatpush1.bf16.msra.mxu1 %v2271_v61  ;;  %v1494_v8 = vpop.permute.xlu0 %1493 }
 0x57d   : > { %v1496_v9 = vpop.permute.xlu1 %1495  ;;  %1303 = vmatprep.subr.mxu1 %v1288_v7 }
 0x57e   : > { %v1497_v6 = vsel %vm816_vm5, %v1494_v8, %v1496_v9  ;;  %v1498_v10 = vsel %vm816_vm5, %v1496_v9, %v1494_v8 }
 0x57f   : > { %v1499_v14 = vmul.f32 %v1498_v10, %v2542_v11  ;;  %v1500_v15 = vmul.f32 %v1497_v6, %v2545_v12 }
 0x580   : > { %1304 = vmatpush1.msra.mxu1 %v1287_v5  ;;  %v1502_v16 = vpop.permute.xlu0 %1501 }
 0x581   : > { %v2279_v17 = vpack.c.bf16 %v2676_v29, %v1499_v14  ;;  %v1504_v18 = vpop.permute.xlu1 %1503  ;;  %v2277_v19 = vpack.c.bf16 %v2678_v34, %v1500_v15  ;;  %2218 = vmatmul.mubr.msk.f32.vlgmr.msra.gmra.mrb[6].mxu1 %vm734_vm4, %v2216_v13  ;;  %v2233_v13 = vld [vmem:[%s2955_s9 + $0x20] sm:$0xff] }
 0x582   : > { %v1506_v21 = vsel %vm836_vm6, %v1504_v18, %v1502_v16  ;;  %1583 = vmatprep.mubr.f32.mxu1 %v2322_v0  ;;  %v1505_v22 = vsel %vm836_vm6, %v1502_v16, %v1504_v18  ;;  %v2235_v14 = vld [vmem:[%s2956_s10 + $0x20] sm:$0xff] }
 0x583   : > { %v1508_v23 = vmul.f32 %v1506_v21, %v2558_v20  ;;  %2278 = vmatprep.subr.bf16.mxu1 %v2277_v19  ;;  %v1507_v24 = vmul.f32 %v1505_v22, %v2561_v25  ;;  %v2236_v15 = vld [vmem:[%s2957_s11 + $0x20] sm:$0xff] }
 0x584   : > { %2280 = vmatpush1.bf16.msra.mxu1 %v2279_v17 }
 0x585   : > { %1523 = vmatprep.subr.mxu1 %v1508_v23 }
 0x588   : > { %1524 = vmatpush1.msra.mxu1 %v1507_v24 }
 0x589   : > { %2226 = vmatmul.mubr.msk.f32.vlgmr.msra.gmra.mrb[8].mxu1 %vm734_vm4, %v2224_v26 }
 0x58a   : > { %1803 = vmatprep.mubr.f32.mxu1 %v2322_v0 }
 0x591   : > { %v1514_v28 = vpop.permute.xlu0 %1513 }
 0x592   : > { %v1597_v41 = vpop.permute.xlu1 %1596 }
 0x595   : > { %v1606_v44 = vpop.permute.xlu0 %1605 }
 0x64c   : > { %v2750_v30 = vpop.f32.mrb[4].mxu1 }
 0x64d   : > { %v2752_v33 = vpop.f32.mrb[5].mxu1 }
 0x654   : > { %v2754_v29 = vpop.f32.mrb[6].mxu1 }
 0x655   : > { %v2756_v34 = vpop.f32.mrb[7].mxu1 }
 0x65c   : > { %v1585_v35 = vpop.f32.mrb[8].mxu1 }
 0x65d   : > { %v1586_v36 = vadd.f32 %v1585_v35, %v1514_v28  ;;  %v1587_v37 = vpop.f32.mrb[9].mxu1 }
 0x65e   : > { %v1588_v38 = vadd.f32 %v1587_v37, %v1514_v28 }
 0x65f   : > { %v1590_v40 = vmax.f32 %v1586_v36, 0.0 }
 0x660   : > { %v1591_v42 = vmax.f32 %v1588_v38, 0.0 }
 0x661   : > { %v1599_v43 = vmul.f32 %v1597_v41, %v1590_v40  ;;  %v2232_v40 = vld [vmem:[%s2954_s8 + $0x20] sm:$0xff] }
 0x662   : > { %v1600_v48 = vmul.f32 %v1597_v41, %v1591_v42 }
 0x663   : > { %v1608_v49 = vadd.f32 %v1606_v44, %v1599_v43 }
 0x664   : > { %v1609_v50 = vadd.f32 %v1606_v44, %v1600_v48 }
 0x665   : > { %1612 = vrot.lane.b32.xlu1 %v1608_v49, %s2324_s27 }
 0x666   : > { %1614 = vrot.lane.b32.xlu0 %v1609_v50, %s2324_s27 }
 0x669   : > { %1620 = vrot.lane.b32.xlu1 %v1608_v49, %s2325_s28 }
 0x66a   : > { %1622 = vrot.lane.b32.xlu0 %v1609_v50, %s2325_s28 }
 0x66d   : > { %1632 = vperm.xlu1 %2312, %v2230_v51  }
 0x6d7   : > { %v1613_v52 = vpop.permute.xlu1 %1612 }
 0x6d8   : > { %v1615_v53 = vpop.permute.xlu0 %1614 }
 0x6d9   : > { %v1616_v54 = vsel %vm692_vm2, %v1613_v52, %v1615_v53  ;;  %v1617_v55 = vsel %vm692_vm2, %v1615_v53, %v1613_v52 }
 0x6da   : > { %v1618_v46 = vmul.f32 %v1617_v55, %v2466_v31  ;;  %v1619_v47 = vmul.f32 %v1616_v54, %v2469_v32 }
 0x6db   : > { %v1621_v56 = vpop.permute.xlu1 %1620 }
 0x6dc   : > { %v2283_v57 = vpack.c.bf16 %v1608_v49, %v1618_v46  ;;  %v1623_v58 = vpop.permute.xlu0 %1622  ;;  %v2281_v59 = vpack.c.bf16 %v1609_v50, %v1619_v47 }
 0x6dd   : > { %v1625_v60 = vsel %vm712_vm3, %v1623_v58, %v1621_v56  ;;  %v1624_v61 = vsel %vm712_vm3, %v1621_v56, %v1623_v58 }
 0x6de   : > { %v1627_v62 = vmul.f32 %v1625_v60, %v2481_v39  ;;  %2282 = vmatprep.subr.bf16.mxu0 %v2281_v59  ;;  %v1626_v63 = vmul.f32 %v1624_v61, %v2485_v45 }
 0x6df   : > { %2284 = vmatpush1.bf16.msra.mxu0 %v2283_v57 }
 0x6e0   : > { %1642 = vmatprep.subr.mxu0 %v1627_v62 }
 0x6e3   : > { %1643 = vmatpush1.msra.mxu0 %v1626_v63 }
 0x6e4   : > { %2231 = vmatmul.mubr.msk.f32.vlgmr.msra.gmra.mrb[14].mxu0 %vm734_vm4, %v2229_v1 }
 0x6e5   : > { %1922 = vmatprep.mubr.f32.mxu0 %v2322_v0 }
 0x6ec   : > { %v1633_v3 = vpop.permute.xlu1 %1632 }
 0x7b7   : > { %v1704_v7 = vpop.f32.mrb[14].mxu0 }
 0x7b8   : > { %v1705_v8 = vadd.f32 %v1704_v7, %v1633_v3  ;;  %v1706_v9 = vpop.f32.mrb[15].mxu0 }
 0x7b9   : > { %v1707_v5 = vadd.f32 %v1706_v9, %v1633_v3 }
 0x7ba   : > { %v1709_v6 = vmax.f32 %v1705_v8, 0.0 }
 0x7bb   : > { %v1710_v10 = vmax.f32 %v1707_v5, 0.0 }
 0x7bc   : > { %1713 = vrot.lane.b32.xlu0 %v1709_v6, %s2326_s17 }
 0x7bd   : > { %1715 = vrot.lane.b32.xlu1 %v1710_v10, %s2326_s17 }
 0x7c0   : > { %1721 = vrot.lane.b32.xlu0 %v1709_v6, %s2327_s18 }
 0x7c1   : > { %1723 = vrot.lane.b32.xlu1 %v1710_v10, %s2327_s18 }
 0x7c4   : > { %1733 = vperm.xlu0 %2311, %v2233_v13  }
 0x7c5   : > { %1816 = vperm.xlu1 %2312, %v2235_v14  }
 0x7c8   : > { %1825 = vperm.xlu0 %2311, %v2236_v15  }
 0x82e   : > { %v1714_v16 = vpop.permute.xlu0 %1713 }
 0x82f   : > { %v1716_v17 = vpop.permute.xlu1 %1715 }
 0x830   : > { %v1717_v18 = vsel %vm816_vm5, %v1714_v16, %v1716_v17  ;;  %v1718_v19 = vsel %vm816_vm5, %v1716_v17, %v1714_v16  ;;  %v2217_v16 = vld [vmem:[%s2955_s9 + $0x10] sm:$0xff]  ;;  %v2241_v17 = vld [vmem:[%s2955_s9 + $0x28] sm:$0xff] }
 0x831   : > { %v1719_v21 = vmul.f32 %v1718_v19, %v2542_v11  ;;  %v1720_v22 = vmul.f32 %v1717_v18, %v2545_v12  ;;  %v616_v18 = vld [vmem:[%s2950_s4 + $0x10] sm:$0xff]  ;;  %v2211_v19 = vld [vmem:[%s2956_s10 + $0x8] sm:$0xff] }
 0x832   : > { %v1722_v23 = vpop.permute.xlu0 %1721 }
 0x833   : > { %v2287_v24 = vpack.c.bf16 %v1709_v6, %v1719_v21  ;;  %v1724_v26 = vpop.permute.xlu1 %1723  ;;  %v2285_v28 = vpack.c.bf16 %v1710_v10, %v1720_v22  ;;  %v2219_v21 = vld [vmem:[%s2956_s10 + $0x10] sm:$0xff]  ;;  %v2243_v22 = vld [vmem:[%s2956_s10 + $0x28] sm:$0xff] }
 0x834   : > { %v1726_v35 = vsel %vm836_vm6, %v1724_v26, %v1722_v23  ;;  %v1725_v36 = vsel %vm836_vm6, %v1722_v23, %v1724_v26  ;;  %v648_v23 = vld [vmem:[%s2951_s5 + $0x10] sm:$0xff] }
 0x835   : > { %v1728_v37 = vmul.f32 %v1726_v35, %v2558_v20  ;;  %2286 = vmatprep.subr.bf16.mxu1 %v2285_v28  ;;  %v1727_v38 = vmul.f32 %v1725_v36, %v2561_v25  ;;  %v2220_v26 = vld [vmem:[%s2957_s11 + $0x10] sm:$0xff]  ;;  %v2244_v28 = vld [vmem:[%s2957_s11 + $0x28] sm:$0xff]  ;;  %v2058_v35 = vld [vmem:[%s2958_s12] sm:$0xff] }
 0x836   : > { %2288 = vmatpush1.bf16.msra.mxu1 %v2287_v24  ;;  %v2212_v24 = vld [vmem:[%s2957_s11 + $0x8] sm:$0xff] }
 0x837   : > { %1743 = vmatprep.subr.mxu1 %v1728_v37  ;;  %v2059_v36 = vld [vmem:[%s2958_s12 + $0x8] sm:$0xff]  ;;  %v2060_v37 = vld [vmem:[%s2958_s12 + $0x10] sm:$0xff] }
 0x83a   : > { %1744 = vmatpush1.msra.mxu1 %v1727_v38  ;;  %v2061_v38 = vld [vmem:[%s2958_s12 + $0x18] sm:$0xff] }
 0x83b   : > { %2234 = vmatmul.mubr.msk.f32.vlgmr.msra.gmra.mrb[10].mxu1 %vm734_vm4, %v2232_v40  ;;  %v2090_v40 = vld [vmem:[%s2959_s13] sm:$0xff] }
 0x83c   : > { %2023 = vmatprep.mubr.f32.mxu1 %v2322_v0  ;;  %v2238_v0 = vld [vmem:[%s2953_s7 + $0x28] sm:$0xff] }
 0x843   : > { %v1734_v41 = vpop.permute.xlu0 %1733 }
 0x844   : > { %v1817_v50 = vpop.permute.xlu1 %1816 }
 0x847   : > { %v1826_v53 = vpop.permute.xlu0 %1825 }
 0x90e   : > { %v1805_v42 = vpop.f32.mrb[10].mxu1 }
 0x90f   : > { %v1806_v43 = vadd.f32 %v1805_v42, %v1734_v41  ;;  %v1807_v44 = vpop.f32.mrb[11].mxu1  ;;  %v2092_v42 = vld [vmem:[%s2959_s13 + $0x10] sm:$0xff] }
 0x910   : > { %v1808_v48 = vadd.f32 %v1807_v44, %v1734_v41  ;;  %v2091_v41 = vld [vmem:[%s2959_s13 + $0x8] sm:$0xff] }
 0x911   : > { %v1810_v49 = vmax.f32 %v1806_v43, 0.0  ;;  %v2093_v43 = vld [vmem:[%s2959_s13 + $0x18] sm:$0xff] }
 0x912   : > { %v1811_v51 = vmax.f32 %v1808_v48, 0.0 }
 0x913   : > { %v1819_v52 = vmul.f32 %v1817_v50, %v1810_v49 }
 0x914   : > { %v1820_v54 = vmul.f32 %v1817_v50, %v1811_v51 }
 0x915   : > { %v1828_v55 = vadd.f32 %v1826_v53, %v1819_v52 }
 0x916   : > { %v1829_v46 = vadd.f32 %v1826_v53, %v1820_v54 }
 0x917   : > { %1832 = vrot.lane.b32.xlu1 %v1828_v55, %s2324_s27 }
 0x918   : > { %1834 = vrot.lane.b32.xlu0 %v1829_v46, %s2324_s27 }
 0x91b   : > { %1840 = vrot.lane.b32.xlu1 %v1828_v55, %s2325_s28 }
 0x91c   : > { %1842 = vrot.lane.b32.xlu0 %v1829_v46, %s2325_s28 }
 0x91f   : > { %1852 = vperm.xlu1 %2312, %v2238_v0  }
 0x989   : > { %v1833_v47 = vpop.permute.xlu1 %1832 }
 0x98a   : > { %v1835_v56 = vpop.permute.xlu0 %1834 }
 0x98b   : > { %v1836_v57 = vsel %vm692_vm2, %v1833_v47, %v1835_v56  ;;  %v1837_v58 = vsel %vm692_vm2, %v1835_v56, %v1833_v47 }
 0x98c   : > { %v1838_v59 = vmul.f32 %v1837_v58, %v2466_v31  ;;  %v1839_v60 = vmul.f32 %v1836_v57, %v2469_v32  ;;  %v2237_v31 = vld [vmem:[%s2952_s6 + $0x28] sm:$0xff] }
 0x98d   : > { %v1841_v61 = vpop.permute.xlu1 %1840 }
 0x98e   : > { %v2291_v62 = vpack.c.bf16 %v1828_v55, %v1838_v59  ;;  %v1843_v63 = vpop.permute.xlu0 %1842  ;;  %v2289_v1 = vpack.c.bf16 %v1829_v46, %v1839_v60 }
 0x98f   : > { %v1845_v3 = vsel %vm712_vm3, %v1843_v63, %v1841_v61  ;;  %v1844_v7 = vsel %vm712_vm3, %v1841_v61, %v1843_v63 }
 0x990   : > { %v1847_v8 = vmul.f32 %v1845_v3, %v2481_v39  ;;  %2290 = vmatprep.subr.bf16.mxu0 %v2289_v1  ;;  %v1846_v9 = vmul.f32 %v1844_v7, %v2485_v45  ;;  %v475_v39 = vld [vmem:[%s2949_s3 + $0x10] sm:$0xff]  ;;  %v2209_v45 = vld [vmem:[%s2955_s9 + $0x8] sm:$0xff] }
 0x991   : > { %2292 = vmatpush1.bf16.msra.mxu0 %v2291_v62 }
 0x992   : > { %1862 = vmatprep.subr.mxu0 %v1847_v8 }
 0x995   : > { %1863 = vmatpush1.msra.mxu0 %v1846_v9 }
 0x996   : > { %2239 = vmatmul.mubr.msk.f32.vlgmr.msra.gmra.mrb[16].mxu0 %vm734_vm4, %v2237_v31 }
 0x99e   : > { %v1853_v32 = vpop.permute.xlu1 %1852 }
 0xa69   : > { %v1924_v5 = vpop.f32.mrb[16].mxu0 }
 0xa6a   : > { %v1925_v6 = vadd.f32 %v1924_v5, %v1853_v32  ;;  %v1926_v10 = vpop.f32.mrb[17].mxu0 }
 0xa6b   : > { %v1927_v13 = vadd.f32 %v1926_v10, %v1853_v32 }
 0xa6c   : > { %v1929_v14 = vmax.f32 %v1925_v6, 0.0 }
 0xa6d   : > { %v1930_v15 = vmax.f32 %v1927_v13, 0.0 }
 0xa6e   : > { %1933 = vrot.lane.b32.xlu0 %v1929_v14, %s2326_s17 }
 0xa6f   : > { %1935 = vrot.lane.b32.xlu1 %v1930_v15, %s2326_s17 }
 0xa72   : > { %1941 = vrot.lane.b32.xlu0 %v1929_v14, %s2327_s18 }
 0xa73   : > { %1943 = vrot.lane.b32.xlu1 %v1930_v15, %s2327_s18 }
 0xa76   : > { %489 = vperm.xlu0 %2311, %v475_v39  }
 0xa77   : > { %1073 = vperm.xlu1 %2312, %v2209_v45  }
 0xa7a   : > { %1293 = vperm.xlu0 %2311, %v2217_v16  }
 0xa7b   : > { %1953 = vperm.xlu1 %2312, %v2241_v17  }
 0xa7e   : > { %630 = vperm.xlu0 %2311, %v616_v18  }
 0xa7f   : > { %1156 = vperm.xlu1 %2312, %v2211_v19  }
 0xa82   : > { %1376 = vperm.xlu0 %2311, %v2219_v21  }
 0xa83   : > { %2036 = vperm.xlu1 %2312, %v2243_v22  }
 0xa86   : > { %662 = vperm.xlu0 %2311, %v648_v23  }
 0xa87   : > { %1165 = vperm.xlu1 %2312, %v2212_v24  }
 0xa8a   : > { %1385 = vperm.xlu0 %2311, %v2220_v26  }
 0xa8b   : > { %2045 = vperm.xlu1 %2312, %v2244_v28  }
 0xa8e   : > { %2064 = vperm.xlu0 %2311, %v2058_v35  }
 0xa8f   : > { %2069 = vperm.xlu1 %2312, %v2059_v36  }
 0xa92   : > { %2074 = vperm.xlu0 %2311, %v2060_v37  }
 0xa93   : > { %2079 = vperm.xlu1 %2312, %v2061_v38  }
 0xa96   : > { %2096 = vperm.xlu0 %2311, %v2090_v40  }
 0xa97   : > { %2101 = vperm.xlu1 %2312, %v2091_v41  }
 0xa9a   : > { %2106 = vperm.xlu0 %2311, %v2092_v42  }
 0xa9b   : > { %2111 = vperm.xlu1 %2312, %v2093_v43  }
 0xae0   : > { %v1934_v44 = vpop.permute.xlu0 %1933 }
 0xae1   : > { %v1936_v48 = vpop.permute.xlu1 %1935 }
 0xae2   : > { %v1937_v49 = vsel %vm816_vm5, %v1934_v44, %v1936_v48  ;;  %v1938_v50 = vsel %vm816_vm5, %v1936_v48, %v1934_v44 }
 0xae3   : > { %v1939_v51 = vmul.f32 %v1938_v50, %v2542_v11  ;;  %v1940_v52 = vmul.f32 %v1937_v49, %v2545_v12  ;;  %v2240_v11 = vld [vmem:[%s2954_s8 + $0x28] sm:$0xff] }
 0xae4   : > { %v1942_v53 = vpop.permute.xlu0 %1941 }
 0xae5   : > { %v2295_v54 = vpack.c.bf16 %v1929_v14, %v1939_v51  ;;  %v1944_v55 = vpop.permute.xlu1 %1943  ;;  %v2293_v46 = vpack.c.bf16 %v1930_v15, %v1940_v52 }
 0xae6   : > { %v1946_v0 = vsel %vm836_vm6, %v1944_v55, %v1942_v53  ;;  %v1945_v47 = vsel %vm836_vm6, %v1942_v53, %v1944_v55 }
 0xae7   : > { %v1948_v56 = vmul.f32 %v1946_v0, %v2558_v20  ;;  %2294 = vmatprep.subr.bf16.mxu1 %v2293_v46  ;;  %v1947_v57 = vmul.f32 %v1945_v47, %v2561_v25 }
 0xae8   : > { %2296 = vmatpush1.bf16.msra.mxu1 %v2295_v54 }
 0xae9   : > { %1963 = vmatprep.subr.mxu1 %v1948_v56 }
 0xaec   : > { %1964 = vmatpush1.msra.mxu1 %v1947_v57 }
 0xaed   : > { %2242 = vmatmul.mubr.msk.f32.vlgmr.msra.gmra.mrb[12].mxu1 %vm734_vm4, %v2240_v11 }
 0xaf5   : > { %v490_v12 = vpop.permute.xlu0 %489 }
 0xaf6   : > { %v1074_v58 = vpop.permute.xlu1 %1073  ;;  %v596_v5 = vadd.f32 %v2517_v2, %v490_v12  ;;  %v598_v6 = vadd.f32 %v2522_v4, %v490_v12 }
 0xaf7   : > { %v1146_v3 = vadd.f32 %v2750_v30, %v1074_v58  ;;  %v1148_v7 = vadd.f32 %v2752_v33, %v1074_v58 }
 0xaf8   : > { %v610_v33 = vmax.f32 %v596_v5, 0.0  ;;  %v611_v17 = vmax.f32 %v598_v6, 0.0 }
 0xaf9   : > { %v1294_v59 = vpop.permute.xlu0 %1293  ;;  %v1150_v10 = vmax.f32 %v1146_v3, 0.0  ;;  %v1151_v13 = vmax.f32 %v1148_v7, 0.0 }
 0xafa   : > { %v2915_v60 = vpop.permute.xlu1 %1953  ;;  %v1366_v63 = vadd.f32 %v2754_v29, %v1294_v59  ;;  %v1368_v25 = vadd.f32 %v2756_v34, %v1294_v59 }
 0xafc   : > { %v1370_v9 = vmax.f32 %v1366_v63, 0.0  ;;  %v1371_v31 = vmax.f32 %v1368_v25, 0.0 }
 0xafd   : > { %v631_v27 = vpop.permute.xlu0 %630 }
 0xafe   : > { %v1157_v61 = vpop.permute.xlu1 %1156  ;;  %v642_v22 = vmul.f32 %v631_v27, %v610_v33  ;;  %v643_v2 = vmul.f32 %v631_v27, %v611_v17 }
 0xaff   : > { %v1159_v34 = vmul.f32 %v1157_v61, %v1150_v10  ;;  %v1160_v39 = vmul.f32 %v1157_v61, %v1151_v13 }
 0xb01   : > { %v1377_v20 = vpop.permute.xlu0 %1376 }
 0xb02   : > { %v2917_v62 = vpop.permute.xlu1 %2036  ;;  %v1379_v15 = vmul.f32 %v1377_v20, %v1370_v9  ;;  %v1380_v29 = vmul.f32 %v1377_v20, %v1371_v31 }
 0xb05   : > { %v663_v1 = vpop.permute.xlu0 %662 }
 0xb06   : > { %v1166_v8 = vpop.permute.xlu1 %1165  ;;  %v674_v26 = vadd.f32 %v663_v1, %v642_v22  ;;  %v675_v28 = vadd.f32 %v663_v1, %v643_v2 }
 0xb07   : > { %v1168_v18 = vadd.f32 %v1166_v8, %v1159_v34  ;;  %v1169_v19 = vadd.f32 %v1166_v8, %v1160_v39 }
 0xb08   : > { %v2054_v44 = vmax.f32 %v674_v26, 0.0  ;;  %v2055_v48 = vmax.f32 %v675_v28, 0.0 }
 0xb09   : > { %v1386_v32 = vpop.permute.xlu0 %1385  ;;  %v2050_v35 = vmax.f32 %v1168_v18, 0.0  ;;  %v2051_v36 = vmax.f32 %v1169_v19, 0.0 }
 0xb0a   : > { %v2046_v14 = vpop.permute.xlu1 %2045  ;;  %v1388_v45 = vadd.f32 %v1386_v32, %v1379_v15  ;;  %v1389_v30 = vadd.f32 %v1386_v32, %v1380_v29 }
 0xb0c   : > { %v2052_v23 = vmax.f32 %v1388_v45, 0.0  ;;  %v2053_v4 = vmax.f32 %v1389_v30, 0.0 }
 0xb0d   : > { %v2065_v16 = vpop.permute.xlu0 %2064 }
 0xb0e   : > { %v2070_v21 = vpop.permute.xlu1 %2069  ;;  %v2082_v38 = vmul.f32 %v2065_v16, %v2050_v35  ;;  %v2083_v40 = vmul.f32 %v2065_v16, %v2051_v36 }
 0xb0f   : > { %v2084_v41 = vmul.f32 %v2070_v21, %v2052_v23  ;;  %v2085_v42 = vmul.f32 %v2070_v21, %v2053_v4 }
 0xb11   : > { %v2075_v24 = vpop.permute.xlu0 %2074 }
 0xb12   : > { %v2080_v37 = vpop.permute.xlu1 %2079  ;;  %v2086_v54 = vmul.f32 %v2075_v24, %v2054_v44  ;;  %v2087_v55 = vmul.f32 %v2075_v24, %v2055_v48 }
 0xb15   : > { %v2097_v43 = vpop.permute.xlu0 %2096 }
 0xb16   : > { %v2114_v49 = vadd.f32 %v2097_v43, %v2082_v38  ;;  %v2115_v50 = vadd.f32 %v2097_v43, %v2083_v40  ;;  %v2102_v51 = vpop.permute.xlu1 %2101 }
 0xb17   : > { %v2116_v52 = vadd.f32 %v2102_v51, %v2084_v41  ;;  %v2117_v53 = vadd.f32 %v2102_v51, %v2085_v42 }
 0xb18   : > { %2122 = vst [vmem:[%s2929_s24] sm:$0xff] %v2114_v49  ;;  %2123 = vst [vmem:[%s2929_s24 + $0x8] sm:$0xff] %v2115_v50 }
 0xb19   : > { %2124 = vst [vmem:[%s2929_s24 + $0x10] sm:$0xff] %v2116_v52  ;;  %2125 = vst [vmem:[%s2929_s24 + $0x18] sm:$0xff] %v2117_v53  ;;  %v2107_v46 = vpop.permute.xlu0 %2106 }
 0xb1a   : > { %v2118_v0 = vadd.f32 %v2107_v46, %v2086_v54  ;;  %v2119_v47 = vadd.f32 %v2107_v46, %v2087_v55  ;;  %v2112_v7 = vpop.permute.xlu1 %2111 }
 0xb1c   : > { %2126 = vst [vmem:[%s2929_s24 + $0x20] sm:$0xff] %v2118_v0  ;;  %2127 = vst [vmem:[%s2929_s24 + $0x28] sm:$0xff] %v2119_v47 }
 0xbc0   : > { %v2025_v56 = vpop.f32.mrb[12].mxu1 }
 0xbc1   : > { %v2026_v57 = vadd.f32 %v2025_v56, %v2915_v60  ;;  %v2027_v11 = vpop.f32.mrb[13].mxu1 }
 0xbc2   : > { %v2028_v12 = vadd.f32 %v2027_v11, %v2915_v60 }
 0xbc3   : > { %v2030_v58 = vmax.f32 %v2026_v57, 0.0 }
 0xbc4   : > { %v2031_v59 = vmax.f32 %v2028_v12, 0.0 }
 0xbc5   : > { %v2039_v27 = vmul.f32 %v2917_v62, %v2030_v58 }
 0xbc6   : > { %v2040_v61 = vmul.f32 %v2917_v62, %v2031_v59 }
 0xbc7   : > { %v2048_v20 = vadd.f32 %v2046_v14, %v2039_v27 }
 0xbc8   : > { %v2049_v63 = vadd.f32 %v2046_v14, %v2040_v61 }
 0xbc9   : > { %v2056_v25 = vmax.f32 %v2048_v20, 0.0 }
 0xbca   : > { %v2057_v1 = vmax.f32 %v2049_v63, 0.0 }
 0xbcb   : > { %v2088_v3 = vmul.f32 %v2080_v37, %v2056_v25 }
 0xbcc   : > { %v2089_v8 = vmul.f32 %v2080_v37, %v2057_v1 }
 0xbcd   : > { %v2120_v9 = vadd.f32 %v2112_v7, %v2088_v3 }
 0xbce   : > { %v2121_v31 = vadd.f32 %v2112_v7, %v2089_v8 }
 0xbcf   : > { %2128 = vst [vmem:[%s2929_s24 + $0x30] sm:$0xff] %v2120_v9 }
 0xbd0   : > { %2129 = vst [vmem:[%s2929_s24 + $0x38] sm:$0xff] %v2121_v31 }
 0xbd1 PF: > { %s24_s29 = sadd.s32 1, %s2320_s29  }
 0xbd2   : > { %p21_p4 = scmp.ge.s32.totalorder %s24_s29, 4  }
 0xbd4   :  { %23 = sbr.rel (!%p21_p4) target bundleno = 1 (0x1), region = 139 }

</bundles_post_ra>
